<compile_context>
chip_gen: v7x
topology: tpu7x:2x2x1
jax: 0.10.0
libtpu: 0.0.40
codegen_flags: <defaults>
</compile_context>

<pallas_src>
import functools

import jax
import jax.numpy as jnp
from jax import lax
from jax.experimental import pallas as pl
from jax.experimental.pallas import tpu as pltpu

EPS = 1e-5
NEG_SLOPE = 0.01                       # F.leaky_relu default negative slope


def _leaky(y):
    return jnp.where(y >= 0, y, NEG_SLOPE * y)


# ------------------------------ kernel helpers ------------------------------ #
def _tap_conv(xs_ref, x, halo, w2d):
    """'same' 3-tap conv of one (C, TL) tile as a single fused MXU matmul.

    xs_ref : (3*C, TL) persistent VMEM scratch staging the shifted taps.
    x      : (C, TL) tile, sequence on the lane axis.
    halo   : (C, 2)  values at global positions tile_start-1 (col 0) and
             tile_end (col 1); already zeroed at the sequence edges.
    w2d    : (Cout, 3*C) taps stacked along K as [k=0 | k=1 | k=2].
    """
    c, tl = x.shape
    xs_ref[pl.ds(0, c), :] = pltpu.roll(x, 1, 1)          # x[l-1]  (lane 0 wraps)
    xs_ref[pl.ds(c, c), :] = x                            # x[l]
    xs_ref[pl.ds(2 * c, c), :] = pltpu.roll(x, tl - 1, 1)  # x[l+1] (last lane wraps)
    # Patch only the two wrapped columns with the halo values (narrow stores).
    xs_ref[pl.ds(0, c), pl.ds(0, 1)] = halo[:, 0:1]
    xs_ref[pl.ds(2 * c, c), pl.ds(tl - 1, 1)] = halo[:, 1:2]
    return jnp.dot(w2d, xs_ref[...], preferred_element_type=jnp.float32,
                   precision=lax.Precision.HIGHEST)


def _valid_mask(shape, tl, seq_len):
    gpos = pl.program_id(1) * tl + lax.broadcasted_iota(jnp.int32, shape, 1)
    return gpos < seq_len


# --------------------------------- kernels ---------------------------------- #
def _conv1_stats_kernel(x_ref, halo_ref, w_ref, sum_ref, ssq_ref, xs_ref,
                        *, tl, seq_len, mask):
    """Accumulate per-(batch, channel) sum / sumsq of conv1(x); h1 is NOT stored."""
    @pl.when(pl.program_id(1) == 0)
    def _init():
        sum_ref[...] = jnp.zeros_like(sum_ref)
        ssq_ref[...] = jnp.zeros_like(ssq_ref)

    h = _tap_conv(xs_ref, x_ref[...], halo_ref[...], w_ref[...])
    if mask:
        h = jnp.where(_valid_mask(h.shape, tl, seq_len), h, 0.0)
    sum_ref[...] += jnp.sum(h, axis=1, keepdims=True)
    ssq_ref[...] += jnp.sum(h * h, axis=1, keepdims=True)


def _bn_conv2_stats_kernel(x_ref, xhalo_ref, ahalo_ref, sc_ref, sh_ref,
                           w1_ref, w2_ref, h2_ref, sum_ref, ssq_ref,
                           xs1_ref, xs2_ref, *, tl, seq_len, mask):
    """h2 = conv2(leaky(bn1(conv1(x)))); also accumulate BN2 statistics of h2."""
    @pl.when(pl.program_id(1) == 0)
    def _init():
        sum_ref[...] = jnp.zeros_like(sum_ref)
        ssq_ref[...] = jnp.zeros_like(ssq_ref)

    h1 = _tap_conv(xs1_ref, x_ref[...], xhalo_ref[...], w1_ref[...])
    a = _leaky(h1 * sc_ref[...] + sh_ref[...])
    if mask:
        valid = _valid_mask(a.shape, tl, seq_len)
        a = jnp.where(valid, a, 0.0)          # conv2 zero-padding past seq end
    h2 = _tap_conv(xs2_ref, a, ahalo_ref[...], w2_ref[...])
    h2_ref[...] = h2
    if mask:
        h2 = jnp.where(valid, h2, 0.0)
    sum_ref[...] += jnp.sum(h2, axis=1, keepdims=True)
    ssq_ref[...] += jnp.sum(h2 * h2, axis=1, keepdims=True)


def _bn_residual_kernel(h2_ref, x_ref, sc_ref, sh_ref, o_ref):
    """out = leaky(x + leaky(bn2(h2))) — pure elementwise."""
    y = _leaky(h2_ref[...] * sc_ref[...] + sh_ref[...])
    o_ref[...] = _leaky(x_ref[...] + y)


# ------------------------------ wrapper helpers ------------------------------ #
def _vmem_caps():
    """(per-step working-set budget, vmem_limit_bytes) sized per TPU generation."""
    try:
        cap = int(pltpu.get_tpu_info().vmem_capacity_bytes)
    except Exception:                      # CPU / interpret / old runtime
        cap = 64 << 20                     # conservative (v7x per-core VMEM)
    budget = min(cap // 4, 24 << 20)
    limit = max(min(cap // 2, 64 << 20), 32 << 20)
    return budget, limit


def _pick_tile(l_pad, bytes_per_lane, budget, cap=8192):
    """Largest multiple-of-128 divisor of l_pad whose working set fits the budget."""
    max_tl = min(cap, max(128, (budget // max(bytes_per_lane, 1)) // 128 * 128))
    best = 128
    m = l_pad // 128
    for d in range(1, m + 1):
        if m % d == 0 and 128 * d <= max_tl:
            best = 128 * d
    return best


def _pack_halo(left, right):
    # left, right: (N, C, T) -> (N, T, C, 2)
    return jnp.transpose(jnp.stack([left, right], axis=-1), (0, 2, 1, 3))


def _x_halos(x_pad, tl):
    """x at positions tile_start-1 / tile_end for every L tile, as (N, T, C, 2)."""
    n, c, lp = x_pad.shape
    xp = jnp.pad(x_pad, ((0, 0), (0, 0), (1, 1)))   # x_pad[q] == xp[q+1]
    left = xp[:, :, 0:lp:tl]                        # x[j*tl - 1]   (0 at start)
    right = xp[:, :, tl + 1::tl]                    # x[(j+1)*tl]   (0 past end)
    return _pack_halo(left, right)


def _a_halos(x_pad, w1_2d, scale1, shift1, tl, seq_len):
    """leaky(bn1(conv1(x))) at tile-boundary columns for conv2, as (N, T, C, 2)."""
    n, c, lp = x_pad.shape
    t = lp // tl
    xp = jnp.pad(x_pad, ((0, 0), (0, 0), (2, 2)))   # x_pad[q] == xp[q+2]

    def boundary_act(pos):                          # pos: (T,) positions
        taps = jnp.concatenate(
            [xp[:, :, pos + 1], xp[:, :, pos + 2], xp[:, :, pos + 3]], axis=1)
        h = jnp.einsum("oc,nct->not", w1_2d, taps,
                       precision=lax.Precision.HIGHEST)        # (N, Cout, T)
        a = _leaky(h * scale1 + shift1)
        valid = (pos >= 0) & (pos < seq_len)        # conv2 zero-padding outside
        return jnp.where(valid[None, None, :], a, 0.0)

    pos_l = jnp.arange(t) * tl - 1
    pos_r = (jnp.arange(t) + 1) * tl
    return _pack_halo(boundary_act(pos_l), boundary_act(pos_r))


def _finalize_bn(sum_nc1, ssq_nc1, gamma, beta, count):
    """Combine per-batch partial sums into per-channel (scale, shift)."""
    s = jnp.sum(sum_nc1, axis=0)[:, 0]
    q = jnp.sum(ssq_nc1, axis=0)[:, 0]
    mean = s / count
    var = jnp.maximum(q / count - mean * mean, 0.0)   # biased (train-mode) var
    inv = lax.rsqrt(var + EPS)
    scale = gamma * inv
    shift = beta - mean * scale
    cout = scale.shape[0]
    return scale.reshape(cout, 1), shift.reshape(cout, 1)


# --------------------------------- wrapper ----------------------------------- #
def residual_block_pallas(x, params):
    """x: (N, C, L) float32 (PyTorch NCW). same_shape=True path (stride=1)."""
    # TODO(synk): same_shape=False (stride-2 conv1 + 1x1 conv3 projection skip)
    # is not implemented.
    n, cin, seq_len = x.shape
    w1, w2 = params["w1"], params["w2"]
    cout = w1.shape[0]
    assert cin == cout, "same_shape=True residual block requires in_ch == out_ch"

    # Pad L up to a multiple of 128 so every tile / store is lane-dense.
    l_pad = ((seq_len + 127) // 128) * 128
    needs_mask = l_pad != seq_len
    x_p = jnp.pad(x, ((0, 0), (0, 0), (0, l_pad - seq_len))) if needs_mask else x

    budget, vmem_limit = _vmem_caps()
    # Stage-1/2 per-lane bytes: x in (x2 buffers) + h2 out (x2) + two tap
    # scratches (3C each) + ~2C of temporaries, all f32.
    tl = _pick_tile(l_pad, (4 * cin + 3 * cin + 7 * cout) * 4, budget)
    t = l_pad // tl
    grid = (n, t)
    count = n * seq_len

    # conv taps stacked along the contraction: (Cout, Cin, 3) -> (Cout, 3*Cin)
    w1_2d = jnp.transpose(w1, (0, 2, 1)).reshape(cout, 3 * cin)
    w2_2d = jnp.transpose(w2, (0, 2, 1)).reshape(cout, 3 * cout)

    x_spec = pl.BlockSpec((None, cin, tl), lambda i, j: (i, 0, j))
    h_spec = pl.BlockSpec((None, cout, tl), lambda i, j: (i, 0, j))
    halo_spec = pl.BlockSpec((None, None, cin, 2), lambda i, j: (i, j, 0, 0))
    stat_spec = pl.BlockSpec((None, cout, 1), lambda i, j: (i, 0, 0))
    vec_spec = pl.BlockSpec((cout, 1), lambda i, j: (0, 0))
    w1_spec = pl.BlockSpec((cout, 3 * cin), lambda i, j: (0, 0))
    w2_spec = pl.BlockSpec((cout, 3 * cout), lambda i, j: (0, 0))

    reduce_params = pltpu.CompilerParams(
        dimension_semantics=("parallel", "arbitrary"),  # L axis carries BN stats
        vmem_limit_bytes=vmem_limit)

    stat_shape = jax.ShapeDtypeStruct((n, cout, 1), jnp.float32)
    act_shape = jax.ShapeDtypeStruct((n, cout, l_pad), jnp.float32)

    x_halo = _x_halos(x_p, tl)

    # ---- stage 1: BN1 statistics of conv1(x) (h1 itself is NOT materialized) ----
    s1, q1 = pl.pallas_call(
        functools.partial(_conv1_stats_kernel, tl=tl, seq_len=seq_len,
                          mask=needs_mask),
        grid=grid,
        in_specs=[x_spec, halo_spec, w1_spec],
        out_specs=[stat_spec, stat_spec],
        out_shape=[stat_shape, stat_shape],
        scratch_shapes=[pltpu.VMEM((3 * cin, tl), jnp.float32)],
        compiler_params=reduce_params,
    )(x_p, x_halo, w1_2d)

    scale1, shift1 = _finalize_bn(s1, q1, params["g1"], params["be1"], count)

    # ---- stage 2: recompute conv1, BN1 + leaky, conv2, BN2 statistics ----
    a_halo = _a_halos(x_p, w1_2d, scale1, shift1, tl, seq_len)
    h2, s2, q2 = pl.pallas_call(
        functools.partial(_bn_conv2_stats_kernel, tl=tl, seq_len=seq_len,
                          mask=needs_mask),
        grid=grid,
        in_specs=[x_spec, halo_spec, halo_spec, vec_spec, vec_spec,
                  w1_spec, w2_spec],
        out_specs=[h_spec, stat_spec, stat_spec],
        out_shape=[act_shape, stat_shape, stat_shape],
        scratch_shapes=[pltpu.VMEM((3 * cin, tl), jnp.float32),
                        pltpu.VMEM((3 * cout, tl), jnp.float32)],
        compiler_params=reduce_params,
    )(x_p, x_halo, a_halo, scale1, shift1, w1_2d, w2_2d)

    scale2, shift2 = _finalize_bn(s2, q2, params["g2"], params["be2"], count)

    # ---- stage 3: out = leaky(x + leaky(bn2(h2))) — own (larger) tile ----
    tl3 = _pick_tile(l_pad, (2 * cin + 4 * cout) * 4, budget)
    e_spec = pl.BlockSpec((None, cout, tl3), lambda i, j: (i, 0, j))
    ex_spec = pl.BlockSpec((None, cin, tl3), lambda i, j: (i, 0, j))
    out = pl.pallas_call(
        _bn_residual_kernel,
        grid=(n, l_pad // tl3),
        in_specs=[e_spec, ex_spec, vec_spec, vec_spec],
        out_specs=e_spec,
        out_shape=act_shape,
        compiler_params=pltpu.CompilerParams(
            dimension_semantics=("parallel", "parallel"),
            vmem_limit_bytes=vmem_limit),
    )(h2, x_p, scale2, shift2)

    if needs_mask:
        out = out[:, :, :seq_len]
    return out


# ------------------------- deterministic parameters ------------------------- #
def init_params(key, in_channels, out_channels):
    k1, k2 = jax.random.split(key)

    def conv_init(k, c_in, c_out):
        bound = (3.0 * c_in) ** -0.5          # PyTorch default fan_in bound
        return jax.random.uniform(k, (c_out, c_in, 3), jnp.float32, -bound, bound)

    return dict(
        w1=conv_init(k1, in_channels, out_channels),
        g1=jnp.ones((out_channels,), jnp.float32),
        be1=jnp.zeros((out_channels,), jnp.float32),
        w2=conv_init(k2, out_channels, out_channels),
        g2=jnp.ones((out_channels,), jnp.float32),
        be2=jnp.zeros((out_channels,), jnp.float32),
    )


# ----------------------------- pure-JAX reference --------------------------- #
def residual_block_reference(x, p):
    def conv(v, w):
        return lax.conv_general_dilated(
            v, w, window_strides=(1,), padding=[(1, 1)],
            dimension_numbers=("NCW", "OIW", "NCW"),
            precision=lax.Precision.HIGHEST)

    def bn(v, g, b):
        m = jnp.mean(v, axis=(0, 2), keepdims=True)
        var = jnp.mean((v - m) ** 2, axis=(0, 2), keepdims=True)
        return (v - m) / jnp.sqrt(var + EPS) * g.reshape(1, -1, 1) + b.reshape(1, -1, 1)

    h = _leaky(bn(conv(x, p["w1"]), p["g1"], p["be1"]))
    h = _leaky(bn(conv(h, p["w2"]), p["g2"], p["be2"]))
    return _leaky(x + h)


if __name__ == "__main__":
    key = jax.random.PRNGKey(0)
    kx, kp = jax.random.split(key)

    N, C, L = 2, 16, 384                  # L is a multiple of 128 -> no padding path
    x = jax.random.normal(kx, (N, C, L), jnp.float32)   # PyTorch NCW input
    params = init_params(kp, C, C)        # same_shape=True => in_ch == out_ch

    out = jax.jit(residual_block_pallas)(x, params)
    out = jax.block_until_ready(out)

    ref = residual_block_reference(x, params)
    assert out.shape == (N, C, L)
    max_err = float(jnp.max(jnp.abs(out - ref)))
    assert max_err < 1e-4, f"mismatch vs. reference: max abs err {max_err}"

    print("KERNEL_OK")
</pallas_src>

<mosaic_0001>
module attributes {stable_mosaic.version = 11 : i64} {
  func.func @_conv1_stats_kernel(%arg0: i32, %arg1: i32, %arg2: memref<1x16x384xf32, #tpu.memory_space<vmem>>, %arg3: memref<1x1x16x2xf32, #tpu.memory_space<vmem>>, %arg4: memref<16x48xf32, #tpu.memory_space<vmem>>, %arg5: memref<1x16x1xf32, #tpu.memory_space<vmem>>, %arg6: memref<1x16x1xf32, #tpu.memory_space<vmem>>, %arg7: memref<48x384xf32, #tpu.memory_space<vmem>>) attributes {dimension_semantics = [#tpu.dimension_semantics<parallel>, #tpu.dimension_semantics<arbitrary>], iteration_bounds = array<i64: 2, 1>, scalar_prefetch = 0 : i64, scratch_operands = 1 : i64, tpu.core_type = #tpu.core_type<tc>, window_params = [{transform_indices = @transform_0, window_bounds = array<i64: 1, 16, 384>}, {transform_indices = @transform_1, window_bounds = array<i64: 1, 1, 16, 2>}, {pipeline_mode = #tpu.pipeline_mode<synchronous>, transform_indices = @transform_2, window_bounds = array<i64: 16, 48>}, {transform_indices = @transform_3, window_bounds = array<i64: 1, 16, 1>}, {transform_indices = @transform_4, window_bounds = array<i64: 1, 16, 1>}]} {
    %c0_i32 = arith.constant 0 : i32
    %0 = arith.cmpi eq, %arg1, %c0_i32 : i32
    %1 = arith.extui %0 : i1 to i32
    %c0_i32_0 = arith.constant 0 : i32
    %2 = arith.cmpi ne, %1, %c0_i32_0 : i32
    scf.if %2 {
      %cst_32 = arith.constant 0.000000e+00 : f32
      %36 = vector.broadcast %cst_32 : f32 to vector<16x1xf32>
      %c0_33 = arith.constant 0 : index
      %c0_34 = arith.constant 0 : index
      %c0_35 = arith.constant 0 : index
      %37 = vector.load %arg5[%c0_33, %c0_34, %c0_35] : memref<1x16x1xf32, #tpu.memory_space<vmem>>, vector<1x16x1xf32>
      %38 = vector.shape_cast %37 : vector<1x16x1xf32> to vector<16x1xf32>
      %39 = vector.shape_cast %36 : vector<16x1xf32> to vector<1x16x1xf32>
      tpu.vector_store %arg5[%c0_33, %c0_34, %c0_35], %39 {strides = array<i32>} : memref<1x16x1xf32, #tpu.memory_space<vmem>>, vector<1x16x1xf32>,
      %cst_36 = arith.constant 0.000000e+00 : f32
      %40 = vector.broadcast %cst_36 : f32 to vector<16x1xf32>
      %c0_37 = arith.constant 0 : index
      %c0_38 = arith.constant 0 : index
      %c0_39 = arith.constant 0 : index
      %41 = vector.load %arg6[%c0_37, %c0_38, %c0_39] : memref<1x16x1xf32, #tpu.memory_space<vmem>>, vector<1x16x1xf32>
      %42 = vector.shape_cast %41 : vector<1x16x1xf32> to vector<16x1xf32>
      %43 = vector.shape_cast %40 : vector<16x1xf32> to vector<1x16x1xf32>
      tpu.vector_store %arg6[%c0_37, %c0_38, %c0_39], %43 {strides = array<i32>} : memref<1x16x1xf32, #tpu.memory_space<vmem>>, vector<1x16x1xf32>,
    } else {
    }
    %c0 = arith.constant 0 : index
    %c0_1 = arith.constant 0 : index
    %c0_2 = arith.constant 0 : index
    %3 = vector.load %arg2[%c0, %c0_1, %c0_2] : memref<1x16x384xf32, #tpu.memory_space<vmem>>, vector<1x16x384xf32>
    %4 = vector.shape_cast %3 : vector<1x16x384xf32> to vector<16x384xf32>
    %c0_3 = arith.constant 0 : index
    %c0_4 = arith.constant 0 : index
    %c0_5 = arith.constant 0 : index
    %c0_6 = arith.constant 0 : index
    %5 = vector.load %arg3[%c0_3, %c0_4, %c0_5, %c0_6] : memref<1x1x16x2xf32, #tpu.memory_space<vmem>>, vector<1x1x16x2xf32>
    %6 = vector.shape_cast %5 : vector<1x1x16x2xf32> to vector<16x2xf32>
    %c0_7 = arith.constant 0 : index
    %c0_8 = arith.constant 0 : index
    %7 = vector.load %arg4[%c0_7, %c0_8] : memref<16x48xf32, #tpu.memory_space<vmem>>, vector<16x48xf32>
    %c1_i32 = arith.constant 1 : i32
    %8 = tpu.dynamic_rotate %4 by %c1_i32 dim 1 : vector<16x384xf32>, i32 -> vector<16x384xf32>
    %c0_9 = arith.constant 0 : index
    %c0_10 = arith.constant 0 : index
    %9 = vector.load %arg7[%c0_9, %c0_10] : memref<48x384xf32, #tpu.memory_space<vmem>>, vector<16x384xf32>
    tpu.vector_store %arg7[%c0_9, %c0_10], %8 {strides = array<i32>} : memref<48x384xf32, #tpu.memory_space<vmem>>, vector<16x384xf32>,
    %c16 = arith.constant 16 : index
    %c0_11 = arith.constant 0 : index
    %10 = vector.load %arg7[%c16, %c0_11] : memref<48x384xf32, #tpu.memory_space<vmem>>, vector<16x384xf32>
    tpu.vector_store %arg7[%c16, %c0_11], %4 {strides = array<i32>} : memref<48x384xf32, #tpu.memory_space<vmem>>, vector<16x384xf32>,
    %c383_i32 = arith.constant 383 : i32
    %11 = tpu.dynamic_rotate %4 by %c383_i32 dim 1 : vector<16x384xf32>, i32 -> vector<16x384xf32>
    %c32 = arith.constant 32 : index
    %c0_12 = arith.constant 0 : index
    %12 = vector.load %arg7[%c32, %c0_12] : memref<48x384xf32, #tpu.memory_space<vmem>>, vector<16x384xf32>
    tpu.vector_store %arg7[%c32, %c0_12], %11 {strides = array<i32>} : memref<48x384xf32, #tpu.memory_space<vmem>>, vector<16x384xf32>,
    %13 = vector.extract_strided_slice %6 {offsets = [0, 0], sizes = [16, 1], strides = [1, 1]} : vector<16x2xf32> to vector<16x1xf32>
    %c0_13 = arith.constant 0 : index
    %c0_14 = arith.constant 0 : index
    %14 = vector.load %arg7[%c0_13, %c0_14] : memref<48x384xf32, #tpu.memory_space<vmem>>, vector<16x1xf32>
    tpu.vector_store %arg7[%c0_13, %c0_14], %13 {strides = array<i32>} : memref<48x384xf32, #tpu.memory_space<vmem>>, vector<16x1xf32>,
    %15 = vector.extract_strided_slice %6 {offsets = [0, 1], sizes = [16, 1], strides = [1, 1]} : vector<16x2xf32> to vector<16x1xf32>
    %c32_15 = arith.constant 32 : index
    %c383 = arith.constant 383 : index
    %16 = vector.load %arg7[%c32_15, %c383] : memref<48x384xf32, #tpu.memory_space<vmem>>, vector<16x1xf32>
    tpu.vector_store %arg7[%c32_15, %c383], %15 {strides = array<i32>} : memref<48x384xf32, #tpu.memory_space<vmem>>, vector<16x1xf32>,
    %c0_16 = arith.constant 0 : index
    %c0_17 = arith.constant 0 : index
    %17 = vector.load %arg7[%c0_16, %c0_17] : memref<48x384xf32, #tpu.memory_space<vmem>>, vector<48x384xf32>
    %cst = arith.constant dense<0.000000e+00> : vector<16x384xf32>
    %18 = tpu.matmul %7, %17, %cst {dimension_numbers = #tpu.dot_dimension_numbers<[1], [0], [0], [1], [0, 0, 1, 1], [], []>, precision = #tpu.contract_precision<fp32>} : vector<16x48xf32>, vector<48x384xf32>, vector<16x384xf32> -> vector<16x384xf32>
    %c0_18 = arith.constant 0 : index
    %c0_19 = arith.constant 0 : index
    %c0_20 = arith.constant 0 : index
    %19 = vector.load %arg5[%c0_18, %c0_19, %c0_20] : memref<1x16x1xf32, #tpu.memory_space<vmem>>, vector<1x16x1xf32>
    %20 = vector.shape_cast %19 : vector<1x16x1xf32> to vector<16x1xf32>
    %cst_21 = arith.constant dense<0.000000e+00> : vector<16xf32>
    %21 = vector.multi_reduction <add>, %18, %cst_21 [1] : vector<16x384xf32> to vector<16xf32>
    %22 = vector.shape_cast %21 : vector<16xf32> to vector<16x1xf32>
    %23 = arith.addf %20, %22 : vector<16x1xf32>
    %c0_22 = arith.constant 0 : index
    %c0_23 = arith.constant 0 : index
    %c0_24 = arith.constant 0 : index
    %24 = vector.load %arg5[%c0_22, %c0_23, %c0_24] : memref<1x16x1xf32, #tpu.memory_space<vmem>>, vector<1x16x1xf32>
    %25 = vector.shape_cast %24 : vector<1x16x1xf32> to vector<16x1xf32>
    %26 = vector.shape_cast %23 : vector<16x1xf32> to vector<1x16x1xf32>
    tpu.vector_store %arg5[%c0_22, %c0_23, %c0_24], %26 {strides = array<i32>} : memref<1x16x1xf32, #tpu.memory_space<vmem>>, vector<1x16x1xf32>,
    %c0_25 = arith.constant 0 : index
    %c0_26 = arith.constant 0 : index
    %c0_27 = arith.constant 0 : index
    %27 = vector.load %arg6[%c0_25, %c0_26, %c0_27] : memref<1x16x1xf32, #tpu.memory_space<vmem>>, vector<1x16x1xf32>
    %28 = vector.shape_cast %27 : vector<1x16x1xf32> to vector<16x1xf32>
    %29 = arith.mulf %18, %18 : vector<16x384xf32>
    %cst_28 = arith.constant dense<0.000000e+00> : vector<16xf32>
    %30 = vector.multi_reduction <add>, %29, %cst_28 [1] : vector<16x384xf32> to vector<16xf32>
    %31 = vector.shape_cast %30 : vector<16xf32> to vector<16x1xf32>
    %32 = arith.addf %28, %31 : vector<16x1xf32>
    %c0_29 = arith.constant 0 : index
    %c0_30 = arith.constant 0 : index
    %c0_31 = arith.constant 0 : index
    %33 = vector.load %arg6[%c0_29, %c0_30, %c0_31] : memref<1x16x1xf32, #tpu.memory_space<vmem>>, vector<1x16x1xf32>
    %34 = vector.shape_cast %33 : vector<1x16x1xf32> to vector<16x1xf32>
    %35 = vector.shape_cast %32 : vector<16x1xf32> to vector<1x16x1xf32>
    tpu.vector_store %arg6[%c0_29, %c0_30, %c0_31], %35 {strides = array<i32>} : memref<1x16x1xf32, #tpu.memory_space<vmem>>, vector<1x16x1xf32>,
    return
  }
  func.func @transform_0(%arg0: i32, %arg1: i32) -> (i32, i32, i32) {
    %c0_i32 = arith.constant 0 : i32
    %c0_i32_0 = arith.constant 0 : i32
    return %arg0, %c0_i32, %arg1 : i32, i32, i32
  }
  func.func @transform_1(%arg0: i32, %arg1: i32) -> (i32, i32, i32, i32) {
    %c0_i32 = arith.constant 0 : i32
    %c0_i32_0 = arith.constant 0 : i32
    %c0_i32_1 = arith.constant 0 : i32
    return %arg0, %arg1, %c0_i32, %c0_i32_0 : i32, i32, i32, i32
  }
  func.func @transform_2(%arg0: i32, %arg1: i32) -> (i32, i32) {
    %c0_i32 = arith.constant 0 : i32
    %c0_i32_0 = arith.constant 0 : i32
    %c0_i32_1 = arith.constant 0 : i32
    return %c0_i32, %c0_i32_0 : i32, i32
  }
  func.func @transform_3(%arg0: i32, %arg1: i32) -> (i32, i32, i32) {
    %c0_i32 = arith.constant 0 : i32
    %c0_i32_0 = arith.constant 0 : i32
    %c0_i32_1 = arith.constant 0 : i32
    return %arg0, %c0_i32, %c0_i32_0 : i32, i32, i32
  }
  func.func @transform_4(%arg0: i32, %arg1: i32) -> (i32, i32, i32) {
    %c0_i32 = arith.constant 0 : i32
    %c0_i32_0 = arith.constant 0 : i32
    %c0_i32_1 = arith.constant 0 : i32
    return %arg0, %c0_i32, %c0_i32_0 : i32, i32, i32
  }
}

module attributes {stable_mosaic.version = 11 : i64} {
  func.func @_bn_residual_kernel(%arg0: i32, %arg1: i32, %arg2: memref<1x16x384xf32, #tpu.memory_space<vmem>>, %arg3: memref<1x16x384xf32, #tpu.memory_space<vmem>>, %arg4: memref<16x1xf32, #tpu.memory_space<vmem>>, %arg5: memref<16x1xf32, #tpu.memory_space<vmem>>, %arg6: memref<1x16x384xf32, #tpu.memory_space<vmem>>) attributes {dimension_semantics = [#tpu.dimension_semantics<parallel>, #tpu.dimension_semantics<parallel>], iteration_bounds = array<i64: 2, 1>, scalar_prefetch = 0 : i64, scratch_operands = 0 : i64, tpu.core_type = #tpu.core_type<tc>, window_params = [{transform_indices = @transform_0, window_bounds = array<i64: 1, 16, 384>}, {transform_indices = @transform_1, window_bounds = array<i64: 1, 16, 384>}, {pipeline_mode = #tpu.pipeline_mode<synchronous>, transform_indices = @transform_2, window_bounds = array<i64: 16, 1>}, {pipeline_mode = #tpu.pipeline_mode<synchronous>, transform_indices = @transform_3, window_bounds = array<i64: 16, 1>}, {transform_indices = @transform_4, window_bounds = array<i64: 1, 16, 384>}]} {
    %c0 = arith.constant 0 : index
    %c0_0 = arith.constant 0 : index
    %c0_1 = arith.constant 0 : index
    %0 = vector.load %arg2[%c0, %c0_0, %c0_1] : memref<1x16x384xf32, #tpu.memory_space<vmem>>, vector<1x16x384xf32>
    %1 = vector.shape_cast %0 : vector<1x16x384xf32> to vector<16x384xf32>
    %c0_2 = arith.constant 0 : index
    %c0_3 = arith.constant 0 : index
    %2 = vector.load %arg4[%c0_2, %c0_3] : memref<16x1xf32, #tpu.memory_space<vmem>>, vector<16x1xf32>
    %3 = vector.broadcast %2 : vector<16x1xf32> to vector<16x384xf32>
    %4 = arith.mulf %1, %3 : vector<16x384xf32>
    %c0_4 = arith.constant 0 : index
    %c0_5 = arith.constant 0 : index
    %5 = vector.load %arg5[%c0_4, %c0_5] : memref<16x1xf32, #tpu.memory_space<vmem>>, vector<16x1xf32>
    %6 = vector.broadcast %5 : vector<16x1xf32> to vector<16x384xf32>
    %7 = arith.addf %4, %6 : vector<16x384xf32>
    %cst = arith.constant 0.000000e+00 : f32
    %8 = vector.broadcast %cst : f32 to vector<16x384xf32>
    %9 = arith.cmpf oge, %7, %8 : vector<16x384xf32>
    %cst_6 = arith.constant 0.00999999977 : f32
    %10 = vector.broadcast %cst_6 : f32 to vector<16x384xf32>
    %11 = arith.mulf %10, %7 : vector<16x384xf32>
    %12 = arith.select %9, %7, %11 : vector<16x384xi1>, vector<16x384xf32>
    %c0_7 = arith.constant 0 : index
    %c0_8 = arith.constant 0 : index
    %c0_9 = arith.constant 0 : index
    %13 = vector.load %arg3[%c0_7, %c0_8, %c0_9] : memref<1x16x384xf32, #tpu.memory_space<vmem>>, vector<1x16x384xf32>
    %14 = vector.shape_cast %13 : vector<1x16x384xf32> to vector<16x384xf32>
    %15 = arith.addf %14, %12 : vector<16x384xf32>
    %cst_10 = arith.constant 0.000000e+00 : f32
    %16 = vector.broadcast %cst_10 : f32 to vector<16x384xf32>
    %17 = arith.cmpf oge, %15, %16 : vector<16x384xf32>
    %cst_11 = arith.constant 0.00999999977 : f32
    %18 = vector.broadcast %cst_11 : f32 to vector<16x384xf32>
    %19 = arith.mulf %18, %15 : vector<16x384xf32>
    %20 = arith.select %17, %15, %19 : vector<16x384xi1>, vector<16x384xf32>
    %c0_12 = arith.constant 0 : index
    %c0_13 = arith.constant 0 : index
    %c0_14 = arith.constant 0 : index
    %21 = vector.load %arg6[%c0_12, %c0_13, %c0_14] : memref<1x16x384xf32, #tpu.memory_space<vmem>>, vector<1x16x384xf32>
    %22 = vector.shape_cast %21 : vector<1x16x384xf32> to vector<16x384xf32>
    %23 = vector.shape_cast %20 : vector<16x384xf32> to vector<1x16x384xf32>
    tpu.vector_store %arg6[%c0_12, %c0_13, %c0_14], %23 {strides = array<i32>} : memref<1x16x384xf32, #tpu.memory_space<vmem>>, vector<1x16x384xf32>,
    return
  }
  func.func @transform_0(%arg0: i32, %arg1: i32) -> (i32, i32, i32) {
    %c0_i32 = arith.constant 0 : i32
    %c0_i32_0 = arith.constant 0 : i32
    return %arg0, %c0_i32, %arg1 : i32, i32, i32
  }
  func.func @transform_1(%arg0: i32, %arg1: i32) -> (i32, i32, i32) {
    %c0_i32 = arith.constant 0 : i32
    %c0_i32_0 = arith.constant 0 : i32
    return %arg0, %c0_i32, %arg1 : i32, i32, i32
  }
  func.func @transform_2(%arg0: i32, %arg1: i32) -> (i32, i32) {
    %c0_i32 = arith.constant 0 : i32
    %c0_i32_0 = arith.constant 0 : i32
    %c0_i32_1 = arith.constant 0 : i32
    return %c0_i32, %c0_i32_0 : i32, i32
  }
  func.func @transform_3(%arg0: i32, %arg1: i32) -> (i32, i32) {
    %c0_i32 = arith.constant 0 : i32
    %c0_i32_0 = arith.constant 0 : i32
    %c0_i32_1 = arith.constant 0 : i32
    return %c0_i32, %c0_i32_0 : i32, i32
  }
  func.func @transform_4(%arg0: i32, %arg1: i32) -> (i32, i32, i32) {
    %c0_i32 = arith.constant 0 : i32
    %c0_i32_0 = arith.constant 0 : i32
    return %arg0, %c0_i32, %arg1 : i32, i32, i32
  }
}

module attributes {stable_mosaic.version = 11 : i64} {
  func.func @_bn_conv2_stats_kernel(%arg0: i32, %arg1: i32, %arg2: memref<1x16x384xf32, #tpu.memory_space<vmem>>, %arg3: memref<1x1x16x2xf32, #tpu.memory_space<vmem>>, %arg4: memref<1x1x16x2xf32, #tpu.memory_space<vmem>>, %arg5: memref<16x1xf32, #tpu.memory_space<vmem>>, %arg6: memref<16x1xf32, #tpu.memory_space<vmem>>, %arg7: memref<16x48xf32, #tpu.memory_space<vmem>>, %arg8: memref<16x48xf32, #tpu.memory_space<vmem>>, %arg9: memref<1x16x384xf32, #tpu.memory_space<vmem>>, %arg10: memref<1x16x1xf32, #tpu.memory_space<vmem>>, %arg11: memref<1x16x1xf32, #tpu.memory_space<vmem>>, %arg12: memref<48x384xf32, #tpu.memory_space<vmem>>, %arg13: memref<48x384xf32, #tpu.memory_space<vmem>>) attributes {dimension_semantics = [#tpu.dimension_semantics<parallel>, #tpu.dimension_semantics<arbitrary>], iteration_bounds = array<i64: 2, 1>, scalar_prefetch = 0 : i64, scratch_operands = 2 : i64, tpu.core_type = #tpu.core_type<tc>, window_params = [{transform_indices = @transform_0, window_bounds = array<i64: 1, 16, 384>}, {transform_indices = @transform_1, window_bounds = array<i64: 1, 1, 16, 2>}, {transform_indices = @transform_2, window_bounds = array<i64: 1, 1, 16, 2>}, {pipeline_mode = #tpu.pipeline_mode<synchronous>, transform_indices = @transform_3, window_bounds = array<i64: 16, 1>}, {pipeline_mode = #tpu.pipeline_mode<synchronous>, transform_indices = @transform_4, window_bounds = array<i64: 16, 1>}, {pipeline_mode = #tpu.pipeline_mode<synchronous>, transform_indices = @transform_5, window_bounds = array<i64: 16, 48>}, {pipeline_mode = #tpu.pipeline_mode<synchronous>, transform_indices = @transform_6, window_bounds = array<i64: 16, 48>}, {transform_indices = @transform_7, window_bounds = array<i64: 1, 16, 384>}, {transform_indices = @transform_8, window_bounds = array<i64: 1, 16, 1>}, {transform_indices = @transform_9, window_bounds = array<i64: 1, 16, 1>}]} {
    %c0_i32 = arith.constant 0 : i32
    %0 = arith.cmpi eq, %arg1, %c0_i32 : i32
    %1 = arith.extui %0 : i1 to i32
    %c0_i32_0 = arith.constant 0 : i32
    %2 = arith.cmpi ne, %1, %c0_i32_0 : i32
    scf.if %2 {
      %cst_62 = arith.constant 0.000000e+00 : f32
      %64 = vector.broadcast %cst_62 : f32 to vector<16x1xf32>
      %c0_63 = arith.constant 0 : index
      %c0_64 = arith.constant 0 : index
      %c0_65 = arith.constant 0 : index
      %65 = vector.load %arg10[%c0_63, %c0_64, %c0_65] : memref<1x16x1xf32, #tpu.memory_space<vmem>>, vector<1x16x1xf32>
      %66 = vector.shape_cast %65 : vector<1x16x1xf32> to vector<16x1xf32>
      %67 = vector.shape_cast %64 : vector<16x1xf32> to vector<1x16x1xf32>
      tpu.vector_store %arg10[%c0_63, %c0_64, %c0_65], %67 {strides = array<i32>} : memref<1x16x1xf32, #tpu.memory_space<vmem>>, vector<1x16x1xf32>,
      %cst_66 = arith.constant 0.000000e+00 : f32
      %68 = vector.broadcast %cst_66 : f32 to vector<16x1xf32>
      %c0_67 = arith.constant 0 : index
      %c0_68 = arith.constant 0 : index
      %c0_69 = arith.constant 0 : index
      %69 = vector.load %arg11[%c0_67, %c0_68, %c0_69] : memref<1x16x1xf32, #tpu.memory_space<vmem>>, vector<1x16x1xf32>
      %70 = vector.shape_cast %69 : vector<1x16x1xf32> to vector<16x1xf32>
      %71 = vector.shape_cast %68 : vector<16x1xf32> to vector<1x16x1xf32>
      tpu.vector_store %arg11[%c0_67, %c0_68, %c0_69], %71 {strides = array<i32>} : memref<1x16x1xf32, #tpu.memory_space<vmem>>, vector<1x16x1xf32>,
    } else {
    }
    %c0 = arith.constant 0 : index
    %c0_1 = arith.constant 0 : index
    %c0_2 = arith.constant 0 : index
    %3 = vector.load %arg2[%c0, %c0_1, %c0_2] : memref<1x16x384xf32, #tpu.memory_space<vmem>>, vector<1x16x384xf32>
    %4 = vector.shape_cast %3 : vector<1x16x384xf32> to vector<16x384xf32>
    %c0_3 = arith.constant 0 : index
    %c0_4 = arith.constant 0 : index
    %c0_5 = arith.constant 0 : index
    %c0_6 = arith.constant 0 : index
    %5 = vector.load %arg3[%c0_3, %c0_4, %c0_5, %c0_6] : memref<1x1x16x2xf32, #tpu.memory_space<vmem>>, vector<1x1x16x2xf32>
    %6 = vector.shape_cast %5 : vector<1x1x16x2xf32> to vector<16x2xf32>
    %c0_7 = arith.constant 0 : index
    %c0_8 = arith.constant 0 : index
    %7 = vector.load %arg7[%c0_7, %c0_8] : memref<16x48xf32, #tpu.memory_space<vmem>>, vector<16x48xf32>
    %c1_i32 = arith.constant 1 : i32
    %8 = tpu.dynamic_rotate %4 by %c1_i32 dim 1 : vector<16x384xf32>, i32 -> vector<16x384xf32>
    %c0_9 = arith.constant 0 : index
    %c0_10 = arith.constant 0 : index
    %9 = vector.load %arg12[%c0_9, %c0_10] : memref<48x384xf32, #tpu.memory_space<vmem>>, vector<16x384xf32>
    tpu.vector_store %arg12[%c0_9, %c0_10], %8 {strides = array<i32>} : memref<48x384xf32, #tpu.memory_space<vmem>>, vector<16x384xf32>,
    %c16 = arith.constant 16 : index
    %c0_11 = arith.constant 0 : index
    %10 = vector.load %arg12[%c16, %c0_11] : memref<48x384xf32, #tpu.memory_space<vmem>>, vector<16x384xf32>
    tpu.vector_store %arg12[%c16, %c0_11], %4 {strides = array<i32>} : memref<48x384xf32, #tpu.memory_space<vmem>>, vector<16x384xf32>,
    %c383_i32 = arith.constant 383 : i32
    %11 = tpu.dynamic_rotate %4 by %c383_i32 dim 1 : vector<16x384xf32>, i32 -> vector<16x384xf32>
    %c32 = arith.constant 32 : index
    %c0_12 = arith.constant 0 : index
    %12 = vector.load %arg12[%c32, %c0_12] : memref<48x384xf32, #tpu.memory_space<vmem>>, vector<16x384xf32>
    tpu.vector_store %arg12[%c32, %c0_12], %11 {strides = array<i32>} : memref<48x384xf32, #tpu.memory_space<vmem>>, vector<16x384xf32>,
    %13 = vector.extract_strided_slice %6 {offsets = [0, 0], sizes = [16, 1], strides = [1, 1]} : vector<16x2xf32> to vector<16x1xf32>
    %c0_13 = arith.constant 0 : index
    %c0_14 = arith.constant 0 : index
    %14 = vector.load %arg12[%c0_13, %c0_14] : memref<48x384xf32, #tpu.memory_space<vmem>>, vector<16x1xf32>
    tpu.vector_store %arg12[%c0_13, %c0_14], %13 {strides = array<i32>} : memref<48x384xf32, #tpu.memory_space<vmem>>, vector<16x1xf32>,
    %15 = vector.extract_strided_slice %6 {offsets = [0, 1], sizes = [16, 1], strides = [1, 1]} : vector<16x2xf32> to vector<16x1xf32>
    %c32_15 = arith.constant 32 : index
    %c383 = arith.constant 383 : index
    %16 = vector.load %arg12[%c32_15, %c383] : memref<48x384xf32, #tpu.memory_space<vmem>>, vector<16x1xf32>
    tpu.vector_store %arg12[%c32_15, %c383], %15 {strides = array<i32>} : memref<48x384xf32, #tpu.memory_space<vmem>>, vector<16x1xf32>,
    %c0_16 = arith.constant 0 : index
    %c0_17 = arith.constant 0 : index
    %17 = vector.load %arg12[%c0_16, %c0_17] : memref<48x384xf32, #tpu.memory_space<vmem>>, vector<48x384xf32>
    %cst = arith.constant dense<0.000000e+00> : vector<16x384xf32>
    %18 = tpu.matmul %7, %17, %cst {dimension_numbers = #tpu.dot_dimension_numbers<[1], [0], [0], [1], [0, 0, 1, 1], [], []>, precision = #tpu.contract_precision<fp32>} : vector<16x48xf32>, vector<48x384xf32>, vector<16x384xf32> -> vector<16x384xf32>
    %c0_18 = arith.constant 0 : index
    %c0_19 = arith.constant 0 : index
    %19 = vector.load %arg5[%c0_18, %c0_19] : memref<16x1xf32, #tpu.memory_space<vmem>>, vector<16x1xf32>
    %20 = vector.broadcast %19 : vector<16x1xf32> to vector<16x384xf32>
    %21 = arith.mulf %18, %20 : vector<16x384xf32>
    %c0_20 = arith.constant 0 : index
    %c0_21 = arith.constant 0 : index
    %22 = vector.load %arg6[%c0_20, %c0_21] : memref<16x1xf32, #tpu.memory_space<vmem>>, vector<16x1xf32>
    %23 = vector.broadcast %22 : vector<16x1xf32> to vector<16x384xf32>
    %24 = arith.addf %21, %23 : vector<16x384xf32>
    %cst_22 = arith.constant 0.000000e+00 : f32
    %25 = vector.broadcast %cst_22 : f32 to vector<16x384xf32>
    %26 = arith.cmpf oge, %24, %25 : vector<16x384xf32>
    %cst_23 = arith.constant 0.00999999977 : f32
    %27 = vector.broadcast %cst_23 : f32 to vector<16x384xf32>
    %28 = arith.mulf %27, %24 : vector<16x384xf32>
    %29 = arith.select %26, %24, %28 : vector<16x384xi1>, vector<16x384xf32>
    %c0_24 = arith.constant 0 : index
    %c0_25 = arith.constant 0 : index
    %c0_26 = arith.constant 0 : index
    %c0_27 = arith.constant 0 : index
    %30 = vector.load %arg4[%c0_24, %c0_25, %c0_26, %c0_27] : memref<1x1x16x2xf32, #tpu.memory_space<vmem>>, vector<1x1x16x2xf32>
    %31 = vector.shape_cast %30 : vector<1x1x16x2xf32> to vector<16x2xf32>
    %c0_28 = arith.constant 0 : index
    %c0_29 = arith.constant 0 : index
    %32 = vector.load %arg8[%c0_28, %c0_29] : memref<16x48xf32, #tpu.memory_space<vmem>>, vector<16x48xf32>
    %c1_i32_30 = arith.constant 1 : i32
    %33 = tpu.dynamic_rotate %29 by %c1_i32_30 dim 1 : vector<16x384xf32>, i32 -> vector<16x384xf32>
    %c0_31 = arith.constant 0 : index
    %c0_32 = arith.constant 0 : index
    %34 = vector.load %arg13[%c0_31, %c0_32] : memref<48x384xf32, #tpu.memory_space<vmem>>, vector<16x384xf32>
    tpu.vector_store %arg13[%c0_31, %c0_32], %33 {strides = array<i32>} : memref<48x384xf32, #tpu.memory_space<vmem>>, vector<16x384xf32>,
    %c16_33 = arith.constant 16 : index
    %c0_34 = arith.constant 0 : index
    %35 = vector.load %arg13[%c16_33, %c0_34] : memref<48x384xf32, #tpu.memory_space<vmem>>, vector<16x384xf32>
    tpu.vector_store %arg13[%c16_33, %c0_34], %29 {strides = array<i32>} : memref<48x384xf32, #tpu.memory_space<vmem>>, vector<16x384xf32>,
    %c383_i32_35 = arith.constant 383 : i32
    %36 = tpu.dynamic_rotate %29 by %c383_i32_35 dim 1 : vector<16x384xf32>, i32 -> vector<16x384xf32>
    %c32_36 = arith.constant 32 : index
    %c0_37 = arith.constant 0 : index
    %37 = vector.load %arg13[%c32_36, %c0_37] : memref<48x384xf32, #tpu.memory_space<vmem>>, vector<16x384xf32>
    tpu.vector_store %arg13[%c32_36, %c0_37], %36 {strides = array<i32>} : memref<48x384xf32, #tpu.memory_space<vmem>>, vector<16x384xf32>,
    %38 = vector.extract_strided_slice %31 {offsets = [0, 0], sizes = [16, 1], strides = [1, 1]} : vector<16x2xf32> to vector<16x1xf32>
    %c0_38 = arith.constant 0 : index
    %c0_39 = arith.constant 0 : index
    %39 = vector.load %arg13[%c0_38, %c0_39] : memref<48x384xf32, #tpu.memory_space<vmem>>, vector<16x1xf32>
    tpu.vector_store %arg13[%c0_38, %c0_39], %38 {strides = array<i32>} : memref<48x384xf32, #tpu.memory_space<vmem>>, vector<16x1xf32>,
    %40 = vector.extract_strided_slice %31 {offsets = [0, 1], sizes = [16, 1], strides = [1, 1]} : vector<16x2xf32> to vector<16x1xf32>
    %c32_40 = arith.constant 32 : index
    %c383_41 = arith.constant 383 : index
    %41 = vector.load %arg13[%c32_40, %c383_41] : memref<48x384xf32, #tpu.memory_space<vmem>>, vector<16x1xf32>
    tpu.vector_store %arg13[%c32_40, %c383_41], %40 {strides = array<i32>} : memref<48x384xf32, #tpu.memory_space<vmem>>, vector<16x1xf32>,
    %c0_42 = arith.constant 0 : index
    %c0_43 = arith.constant 0 : index
    %42 = vector.load %arg13[%c0_42, %c0_43] : memref<48x384xf32, #tpu.memory_space<vmem>>, vector<48x384xf32>
    %cst_44 = arith.constant dense<0.000000e+00> : vector<16x384xf32>
    %43 = tpu.matmul %32, %42, %cst_44 {dimension_numbers = #tpu.dot_dimension_numbers<[1], [0], [0], [1], [0, 0, 1, 1], [], []>, precision = #tpu.contract_precision<fp32>} : vector<16x48xf32>, vector<48x384xf32>, vector<16x384xf32> -> vector<16x384xf32>
    %c0_45 = arith.constant 0 : index
    %c0_46 = arith.constant 0 : index
    %c0_47 = arith.constant 0 : index
    %44 = vector.load %arg9[%c0_45, %c0_46, %c0_47] : memref<1x16x384xf32, #tpu.memory_space<vmem>>, vector<1x16x384xf32>
    %45 = vector.shape_cast %44 : vector<1x16x384xf32> to vector<16x384xf32>
    %46 = vector.shape_cast %43 : vector<16x384xf32> to vector<1x16x384xf32>
    tpu.vector_store %arg9[%c0_45, %c0_46, %c0_47], %46 {strides = array<i32>} : memref<1x16x384xf32, #tpu.memory_space<vmem>>, vector<1x16x384xf32>,
    %c0_48 = arith.constant 0 : index
    %c0_49 = arith.constant 0 : index
    %c0_50 = arith.constant 0 : index
    %47 = vector.load %arg10[%c0_48, %c0_49, %c0_50] : memref<1x16x1xf32, #tpu.memory_space<vmem>>, vector<1x16x1xf32>
    %48 = vector.shape_cast %47 : vector<1x16x1xf32> to vector<16x1xf32>
    %cst_51 = arith.constant dense<0.000000e+00> : vector<16xf32>
    %49 = vector.multi_reduction <add>, %43, %cst_51 [1] : vector<16x384xf32> to vector<16xf32>
    %50 = vector.shape_cast %49 : vector<16xf32> to vector<16x1xf32>
    %51 = arith.addf %48, %50 : vector<16x1xf32>
    %c0_52 = arith.constant 0 : index
    %c0_53 = arith.constant 0 : index
    %c0_54 = arith.constant 0 : index
    %52 = vector.load %arg10[%c0_52, %c0_53, %c0_54] : memref<1x16x1xf32, #tpu.memory_space<vmem>>, vector<1x16x1xf32>
    %53 = vector.shape_cast %52 : vector<1x16x1xf32> to vector<16x1xf32>
    %54 = vector.shape_cast %51 : vector<16x1xf32> to vector<1x16x1xf32>
    tpu.vector_store %arg10[%c0_52, %c0_53, %c0_54], %54 {strides = array<i32>} : memref<1x16x1xf32, #tpu.memory_space<vmem>>, vector<1x16x1xf32>,
    %c0_55 = arith.constant 0 : index
    %c0_56 = arith.constant 0 : index
    %c0_57 = arith.constant 0 : index
    %55 = vector.load %arg11[%c0_55, %c0_56, %c0_57] : memref<1x16x1xf32, #tpu.memory_space<vmem>>, vector<1x16x1xf32>
    %56 = vector.shape_cast %55 : vector<1x16x1xf32> to vector<16x1xf32>
    %57 = arith.mulf %43, %43 : vector<16x384xf32>
    %cst_58 = arith.constant dense<0.000000e+00> : vector<16xf32>
    %58 = vector.multi_reduction <add>, %57, %cst_58 [1] : vector<16x384xf32> to vector<16xf32>
    %59 = vector.shape_cast %58 : vector<16xf32> to vector<16x1xf32>
    %60 = arith.addf %56, %59 : vector<16x1xf32>
    %c0_59 = arith.constant 0 : index
    %c0_60 = arith.constant 0 : index
    %c0_61 = arith.constant 0 : index
    %61 = vector.load %arg11[%c0_59, %c0_60, %c0_61] : memref<1x16x1xf32, #tpu.memory_space<vmem>>, vector<1x16x1xf32>
    %62 = vector.shape_cast %61 : vector<1x16x1xf32> to vector<16x1xf32>
    %63 = vector.shape_cast %60 : vector<16x1xf32> to vector<1x16x1xf32>
    tpu.vector_store %arg11[%c0_59, %c0_60, %c0_61], %63 {strides = array<i32>} : memref<1x16x1xf32, #tpu.memory_space<vmem>>, vector<1x16x1xf32>,
    return
  }
  func.func @transform_0(%arg0: i32, %arg1: i32) -> (i32, i32, i32) {
    %c0_i32 = arith.constant 0 : i32
    %c0_i32_0 = arith.constant 0 : i32
    return %arg0, %c0_i32, %arg1 : i32, i32, i32
  }
  func.func @transform_1(%arg0: i32, %arg1: i32) -> (i32, i32, i32, i32) {
    %c0_i32 = arith.constant 0 : i32
    %c0_i32_0 = arith.constant 0 : i32
    %c0_i32_1 = arith.constant 0 : i32
    return %arg0, %arg1, %c0_i32, %c0_i32_0 : i32, i32, i32, i32
  }
  func.func @transform_2(%arg0: i32, %arg1: i32) -> (i32, i32, i32, i32) {
    %c0_i32 = arith.constant 0 : i32
    %c0_i32_0 = arith.constant 0 : i32
    %c0_i32_1 = arith.constant 0 : i32
    return %arg0, %arg1, %c0_i32, %c0_i32_0 : i32, i32, i32, i32
  }
  func.func @transform_3(%arg0: i32, %arg1: i32) -> (i32, i32) {
    %c0_i32 = arith.constant 0 : i32
    %c0_i32_0 = arith.constant 0 : i32
    %c0_i32_1 = arith.constant 0 : i32
    return %c0_i32, %c0_i32_0 : i32, i32
  }
  func.func @transform_4(%arg0: i32, %arg1: i32) -> (i32, i32) {
    %c0_i32 = arith.constant 0 : i32
    %c0_i32_0 = arith.constant 0 : i32
    %c0_i32_1 = arith.constant 0 : i32
    return %c0_i32, %c0_i32_0 : i32, i32
  }
  func.func @transform_5(%arg0: i32, %arg1: i32) -> (i32, i32) {
    %c0_i32 = arith.constant 0 : i32
    %c0_i32_0 = arith.constant 0 : i32
    %c0_i32_1 = arith.constant 0 : i32
    return %c0_i32, %c0_i32_0 : i32, i32
  }
  func.func @transform_6(%arg0: i32, %arg1: i32) -> (i32, i32) {
    %c0_i32 = arith.constant 0 : i32
    %c0_i32_0 = arith.constant 0 : i32
    %c0_i32_1 = arith.constant 0 : i32
    return %c0_i32, %c0_i32_0 : i32, i32
  }
  func.func @transform_7(%arg0: i32, %arg1: i32) -> (i32, i32, i32) {
    %c0_i32 = arith.constant 0 : i32
    %c0_i32_0 = arith.constant 0 : i32
    return %arg0, %c0_i32, %arg1 : i32, i32, i32
  }
  func.func @transform_8(%arg0: i32, %arg1: i32) -> (i32, i32, i32) {
    %c0_i32 = arith.constant 0 : i32
    %c0_i32_0 = arith.constant 0 : i32
    %c0_i32_1 = arith.constant 0 : i32
    return %arg0, %c0_i32, %c0_i32_0 : i32, i32, i32
  }
  func.func @transform_9(%arg0: i32, %arg1: i32) -> (i32, i32, i32) {
    %c0_i32 = arith.constant 0 : i32
    %c0_i32_0 = arith.constant 0 : i32
    %c0_i32_1 = arith.constant 0 : i32
    return %arg0, %c0_i32, %c0_i32_0 : i32, i32, i32
  }
}

</mosaic_0001>

<bundles_post_ra>
// kernel: residual_block_pallas.5
= control target key start
LH: loop header
LB: loop body
LE: loop exit
PB: predicated region body
PF: predicated region fallthrough
CT: control target
= control target key end

     0   :  { %9 = vsyncpa [#allocation3], 0  ;;  %s800_s0 = inlined_call_operand.vmem [shape: f32[2,16,384], index: 0, kind: input, shape index: {}]   ;;  %s801_s1 = inlined_call_operand.vmem [shape: f32[2,16,384], index: 1, kind: input, shape index: {}]   ;;  %s802_s2 = inlined_call_operand.vmem [shape: f32[16,1], index: 2, kind: input, shape index: {}]   ;;  %s803_s3 = inlined_call_operand.vmem [shape: f32[16,1], index: 3, kind: input, shape index: {}]   ;;  %s804_s4 = inlined_call_operand.hbm [shape: f32[2,16,384], index: 4, kind: output, shape index: {}]  }
   0x1   :  { %11 = vsyncpa [#allocation3 + $0x1], 0  ;;  %s654_s15 = smov 0   ;;  %s656_s16 = smov 0  }
   0x2   :  { %s658_s17 = smov 0   ;;  %s660_s18 = smov 0  }
   0x3   :  { %s662_s19 = smov 0   ;;  %s664_s20 = smov 0  }
   0x4 LB: > { %s472_s21 = sadd.s32 4294967295, %s623_s20   ;;  %s473_s22 = sadd.s32 4294967294, %s623_s20   ;;  %s623_s20 = sphi %s664_s20, %s17_s20   ;;  %s619_s19 = sphi %s662_s19, %s811_s19   ;;  %s615_s18 = sphi %s660_s18, %s810_s18   ;;  %s611_s17 = sphi %s658_s17, %s809_s17   ;;  %s607_s16 = sphi %s656_s16, %s808_s16   ;;  %s603_s15 = sphi %s654_s15, %s807_s15  }
   0x5   : > { %s29_s23 = sadd.s32 1, %s619_s19  ;;  %s136_s24 = sadd.s32 1, %s611_s17 }
   0x6   : > { %p31_p0 = scmp.ge.s32.totalorder %s29_s23, 2  ;;  %p146_p1 = scmp.ne.s32.totalorder %s611_s17, %s607_s16 }
   0x7   : > { %p147_p2 = scmp.eq.s32.totalorder %s472_s21, 1  ;;  %p152_p3 = scmp.ne.s32.totalorder %s607_s16, %s603_s15 }
   0x8   : > { %s813_s23 = smov (%p31_p0, %s29_s23), 0  ;;  %p153_p5 = scmp.eq.s32.totalorder %s473_s22, 1 }
   0x9   : > { %p694_p4 = por %p147_p2, %p146_p1  ;;  %s131_s26 = ssub.s32 %s619_s19, %s813_s23 }
   0xa   : > { %p476_p6 = scmp.ge.s32.totalorder %s623_s20, 1  ;;  %p134_p7 = scmp.eq.s32.totalorder %s131_s26, 0 }
   0xb   : > { %p701_p8 = por %p153_p5, %p152_p3  ;;  %p203_p9 = scmp.lt.s32.totalorder %s623_s20, 3 }
   0xc   : > { %s707_s28 = scalar_select %p134_p7, %s611_s17, %s136_s24  }
   0xd   : > { %p204_p10 = pnand %p476_p6, %p203_p9 }
   0xe   : > { %v287_v0 = vld [vmem:[%s803_s3] sm:$0xff] (!%p204_p10)  ;;  %v625_v2 = vmov (!%p204_p10), 0   ;;  %v288_v3 = vld [vmem:[%s803_s3 + $0x8] sm:$0xff] (!%p204_p10)  ;;  %p243_p11 = scmp.lt.s32.totalorder (!%p204_p10), %s615_s18, 1  ;;  %s239_s22 = sand.u32 (!%p204_p10), 1, %s607_s16  }
   0xf   : > { %207 = sbr.rel (%p204_p10) target bundleno = 179 (0xb3), region = 36  ;;  %v269_v1 = vld [vmem:[%s802_s2] sm:$0xff] (!%p204_p10)  ;;  %544 = vset.pattern.permute.xlu1 (!%p204_p10), %v625_v2  ;;  %543 = vset.pattern.permute.xlu0 (!%p204_p10), %v625_v2  ;;  %v270_v4 = vld [vmem:[%s802_s2 + $0x8] sm:$0xff] (!%p204_p10) }
  0x10   : > { %291 = vperm.xlu1 (!%p204_p10), %544, %v287_v0   ;;  %273 = vperm.xlu0 (!%p204_p10), %543, %v269_v1   ;;  %s734_s30 = smul.u32 (!%p204_p10), 48, %s239_s22 }
  0x11   : > { %s484_s6 = smul.u32 (!%p204_p10), 768, %s615_s18 }
  0x12   : > { %s241_s5 = scalar_lea.vmem (!%p204_p10), [#allocation2], %s734_s30 }
  0x13   : > { %s375_s7 = sshll.u32 (!%p204_p10), %s241_s5, 4  ;;  %s748_s10 = scalar_lea.hbm (!%p204_p10), %s804_s4, %s484_s6  ;;  %s750_s7 = int_to_ptr.vmem [resolvable:$true] %s375_s7 }
  0x14   : > { %296 = vperm.xlu1 (!%p204_p10), %544, %v288_v3   ;;  %278 = vperm.xlu0 (!%p204_p10), %543, %v270_v4  }
  0x16   : > { %s244_s11 = scalar_select %p243_p11, %s615_s18, 1 }
  0x17   : > { %s754_s18 = scalar_lea.sflag [#allocation3], %s239_s22 }
  0x18   : > { %s483_s12 = smul.u32 48, %s244_s11  ;;  %s545_s11 = scalar_lea.vmem %s750_s7, 768 }
  0x19   : > { %p546_p12 = scmp.ne.s32.totalorder %s750_s7, %s545_s11 }
  0x1a   : > { %s250_s21 = scalar_lea.vmem %s800_s0, %s483_s12  ;;  %s730_s29 = scalar_lea.vmem %s801_s1, %s483_s12 }
  0x1b   : > { %v263_v5 = vld [vmem:[%s250_s21] sm:$0xff]  ;;  %v264_v6 = vld [vmem:[%s250_s21 + $0x8] sm:$0xff]  ;;  %v265_v7 = vld [vmem:[%s250_s21 + $0x10] sm:$0xff]  ;;  %p547_p13 = pnand %p546_p12, %p694_p4  ;;  %s626_s12 = smov [#allocation2]  }
  0x1c   : > { %v266_v16 = vld [vmem:[%s250_s21 + $0x18] sm:$0xff]  ;;  %v267_v17 = vld [vmem:[%s250_s21 + $0x20] sm:$0xff]  ;;  %v268_v19 = vld [vmem:[%s250_s21 + $0x28] sm:$0xff]  ;;  %s549_s13 = sshll.u32 %s626_s12, 4  ;;  %s550_s13 = int_to_ptr.vmem [resolvable:$false] %s549_s13 }
  0x1d   : > { %v323_v21 = vld [vmem:[%s730_s29] sm:$0xff]  ;;  %v324_v24 = vld [vmem:[%s730_s29 + $0x8] sm:$0xff]  ;;  %v325_v25 = vld [vmem:[%s730_s29 + $0x10] sm:$0xff]  ;;  %p548_p0 = pneg %p547_p13  ;;  %s551_s14 = scalar_lea.vmem %s550_s13, 1536 }
  0x1e   : > { %v326_v39 = vld [vmem:[%s730_s29 + $0x18] sm:$0xff]  ;;  %v327_v46 = vld [vmem:[%s730_s29 + $0x20] sm:$0xff]  ;;  %v328_v51 = vld [vmem:[%s730_s29 + $0x28] sm:$0xff]  ;;  %p552_p1 = scmp.lt.s32.totalorder %s750_s7, %s550_s13  ;;  %p553_p2 = scmp.lt.s32.totalorder %s551_s14, %s545_s11 }
  0x20   : > { %p554_p3 = por %p553_p2, %p552_p1 }
  0x22   : > { %p555_p5 = pnand %p554_p3, %p548_p0 }
  0x8f   : > { %v274_v8 = vpop.permute.xlu0 %273  ;;  %v292_v9 = vpop.permute.xlu1 %291 }
  0x90   : > { %v281_v10 = vmul.f32 %v274_v8, %v263_v5  ;;  %v282_v11 = vmul.f32 %v274_v8, %v264_v6  ;;  %v283_v12 = vmul.f32 %v274_v8, %v265_v7 }
  0x92   : > { %v299_v13 = vadd.f32 %v292_v9, %v281_v10  ;;  %v300_v14 = vadd.f32 %v292_v9, %v282_v11  ;;  %v301_v15 = vadd.f32 %v292_v9, %v283_v12 }
  0x93   : > { %v279_v18 = vpop.permute.xlu0 %278  ;;  %v297_v29 = vpop.permute.xlu1 %296 }
  0x94   : > { %vm305_vm0 = vcmp.ge.f32.partialorder %v299_v13, 0.0  ;;  %vm306_vm1 = vcmp.ge.f32.partialorder %v300_v14, 0.0  ;;  %vm307_vm2 = vcmp.ge.f32.partialorder %v301_v15, 0.0  ;;  %v311_v20 = vmul.f32 0.01, %v299_v13 }
  0x95   : > { %v312_v22 = vmul.f32 0.01, %v300_v14  ;;  %v313_v23 = vmul.f32 0.01, %v301_v15  ;;  %v284_v26 = vmul.f32 %v279_v18, %v266_v16  ;;  %v285_v27 = vmul.f32 %v279_v18, %v267_v17 }
  0x96   : > { %v317_v28 = vsel %vm305_vm0, %v299_v13, %v311_v20  ;;  %v286_v30 = vmul.f32 %v279_v18, %v268_v19 }
  0x97   : > { %v318_v31 = vsel %vm306_vm1, %v300_v14, %v312_v22  ;;  %v319_v32 = vsel %vm307_vm2, %v301_v15, %v313_v23  ;;  %v329_v33 = vadd.f32 %v323_v21, %v317_v28  ;;  %v302_v34 = vadd.f32 %v297_v29, %v284_v26 }
  0x98   : > { %v330_v35 = vadd.f32 %v324_v24, %v318_v31  ;;  %v331_v36 = vadd.f32 %v325_v25, %v319_v32  ;;  %v303_v37 = vadd.f32 %v297_v29, %v285_v27  ;;  %v304_v38 = vadd.f32 %v297_v29, %v286_v30 }
  0x99   : > { %vm335_vm3 = vcmp.ge.f32.partialorder %v329_v33, 0.0  ;;  %v341_v40 = vmul.f32 0.01, %v329_v33  ;;  %vm308_vm4 = vcmp.ge.f32.partialorder %v302_v34, 0.0  ;;  %v314_v41 = vmul.f32 0.01, %v302_v34 }
  0x9a   : > { %vm336_vm5 = vcmp.ge.f32.partialorder %v330_v35, 0.0  ;;  %vm337_vm6 = vcmp.ge.f32.partialorder %v331_v36, 0.0  ;;  %v342_v42 = vmul.f32 0.01, %v330_v35  ;;  %v343_v43 = vmul.f32 0.01, %v331_v36 }
  0x9b   : > { %v347_v44 = vsel %vm335_vm3, %v329_v33, %v341_v40  ;;  %vm309_vm7 = vcmp.ge.f32.partialorder %v303_v37, 0.0  ;;  %vm310_vm8 = vcmp.ge.f32.partialorder %v304_v38, 0.0  ;;  %v315_v45 = vmul.f32 0.01, %v303_v37 }
  0x9c   : > { %v348_v47 = vsel %vm336_vm5, %v330_v35, %v342_v42  ;;  %v349_v48 = vsel %vm337_vm6, %v331_v36, %v343_v43  ;;  %353 = vst [vmem:[%s241_s5] sm:$0xff] %v347_v44  ;;  %v316_v49 = vmul.f32 0.01, %v304_v38  ;;  %v320_v50 = vsel %vm308_vm4, %v302_v34, %v314_v41 }
  0x9d   : > { %354 = vst [vmem:[%s241_s5 + $0x8] sm:$0xff] %v348_v47  ;;  %355 = vst [vmem:[%s241_s5 + $0x10] sm:$0xff] %v349_v48  ;;  %v321_v52 = vsel %vm309_vm7, %v303_v37, %v315_v45  ;;  %v332_v53 = vadd.f32 %v326_v39, %v320_v50 }
  0x9e   : > { %v322_v54 = vsel %vm310_vm8, %v304_v38, %v316_v49  ;;  %v333_v55 = vadd.f32 %v327_v46, %v321_v52 }
  0x9f   : > { %v334_v56 = vadd.f32 %v328_v51, %v322_v54  ;;  %vm338_vm9 = vcmp.ge.f32.partialorder %v332_v53, 0.0  ;;  %v344_v57 = vmul.f32 0.01, %v332_v53 }
  0xa0   : > { %vm339_vm10 = vcmp.ge.f32.partialorder %v333_v55, 0.0  ;;  %v345_v58 = vmul.f32 0.01, %v333_v55 }
  0xa1   : > { %vm340_vm11 = vcmp.ge.f32.partialorder %v334_v56, 0.0  ;;  %v346_v59 = vmul.f32 0.01, %v334_v56  ;;  %v350_v60 = vsel %vm338_vm9, %v332_v53, %v344_v57 }
  0xa2   : > { %v351_v61 = vsel %vm339_vm10, %v333_v55, %v345_v58  ;;  %356 = vst [vmem:[%s241_s5 + $0x18] sm:$0xff] %v350_v60 }
  0xa3   : > { %v352_v62 = vsel %vm340_vm11, %v334_v56, %v346_v59  ;;  %357 = vst [vmem:[%s241_s5 + $0x20] sm:$0xff] %v351_v61 }
  0xa4   : > { %358 = vst [vmem:[%s241_s5 + $0x28] sm:$0xff] %v352_v62 }
  0xa5   : > { %558 = shalt.err (!%p555_p5)
}
  0xa6   : > { %s559_s21 = scalar_lea.hbm %s748_s10, 768  ;;  %s563_s26 = scalar_lea.hbm %s804_s4, 1536 }
  0xa7   : > { %p560_p6 = scmp.ne.s32.totalorder %s748_s10, %s559_s21  ;;  %p564_p10 = scmp.lt.u32.totalorder %s748_s10, %s804_s4 }
  0xa8   : > { %p565_p11 = scmp.lt.u32.totalorder %s563_s26, %s559_s21  ;;  %p567_p13 = scmp.lt.u32.totalorder %s559_s21, %s748_s10 }
  0xa9   : > { %p561_p7 = pnand %p560_p6, %p694_p4 }
  0xaa   : > { %p566_p12 = por %p565_p11, %p564_p10 }
  0xab   : > { %p562_p9 = pneg %p561_p7 }
  0xac   : > { %p568_p0 = por %p567_p13, %p566_p12 }
  0xae   : > { %p569_p1 = pnand %p568_p0, %p562_p9 }
  0xb0   : > { %572 = shalt.err (!%p569_p1)
}
  0xb1   : > { %s627_s5 = smov 384   ;;  %s628_s6 = smov 24  }
  0xb2   : > { %485 = dma.vmem_to_hbm [thread:$0]  (%p694_p4), %s750_s7, 768, %s748_s10, %s754_s18, %s627_s5, %s627_s5, %s628_s6  }
  0xb3 PF: > { %p491_p2 = scmp.ge.s32.totalorder %s623_s20, 2  ;;  %s390_s8 = sand.u32 1, %s603_s15  }
  0xb4   : > { %s391_s9 = scalar_lea.sflag [#allocation3], %s390_s8 }
  0xb5   : > { %p488_p3 = pnand %p491_p2, %p701_p8 }
  0xb7   : > { %598 = dma.done.wait (!%p488_p3), %s391_s9, 768  }
  0xb8   : > { %600 = vsyncadd (!%p488_p3), %s391_s9, 4294966528  ;;  %s17_s20 = sadd.s32 1, %s623_s20   ;;  %s807_s15 = smov %s607_s16 }
  0xb9   : > { %p14_p5 = scmp.ge.s32.totalorder %s17_s20, 4   ;;  %s808_s16 = smov %s611_s17 }
  0xba   : > { %s809_s17 = smov %s707_s28  ;;  %s810_s18 = smov %s619_s19 }
  0xbb   : > { %s811_s19 = smov %s813_s23  ;;  %16 = sbr.rel (!%p14_p5) target bundleno = 4 (0x4), region = 74 }
  0xc2   :  { %396 = vsyncpa [#allocation3], 1 }
  0xc3   :  { %398 = vsyncpa [#allocation3 + $0x1], 1 }

// kernel: residual_block_pallas.3
= control target key start
LH: loop header
LB: loop body
LE: loop exit
PB: predicated region body
PF: predicated region fallthrough
CT: control target
= control target key end

     0   :  { %s2155_s15 = smov 0   ;;  %s2157_s16 = smov 0   ;;  %s2518_s0 = inlined_call_operand.vmem [shape: f32[2,16,384], index: 0, kind: input, shape index: {}]   ;;  %s2519_s1 = inlined_call_operand.vmem [shape: f32[2,1,16,2], index: 1, kind: input, shape index: {}]   ;;  %s2520_s2 = inlined_call_operand.vmem [shape: f32[16,48], index: 2, kind: input, shape index: {}]   ;;  %s2521_s3 = inlined_call_operand.vmem [shape: f32[2,16,1], index: 3, kind: output, shape index: {0}]   ;;  %s2522_s4 = inlined_call_operand.vmem [shape: f32[2,16,1], index: 4, kind: output, shape index: {1}]  }
   0x1   :  { %s2159_s17 = smov 0  }
   0x2 LB: > { %s27_s18 = sadd.s32 1, %s2120_s16  ;;  %p1748_p0 = scmp.ge.s32.totalorder %s2124_s17, 1  ;;  %s2124_s17 = sphi %s2159_s17, %s15_s17   ;;  %s2120_s16 = sphi %s2157_s16, %s2534_s16   ;;  %s2116_s15 = sphi %s2155_s15, %s2533_s15  }
   0x3   : > { %p29_p1 = scmp.ge.s32.totalorder %s27_s18, 2  ;;  %p200_p2 = scmp.lt.s32.totalorder %s2124_s17, 3 }
   0x5   : > { %s2536_s18 = smov (%p29_p1, %s27_s18), 0  ;;  %p201_p3 = pnand %p1748_p0, %p200_p2 }
   0x6   : > { %p245_p4 = scmp.lt.s32.totalorder (!%p201_p3), %s2116_s15, 1  ;;  %s2126_s23 = smov (!%p201_p3), 1   ;;  %v290_v10 = vld [vmem:[%s2520_s2] sm:$0xff] (!%p201_p3)  ;;  %vm382_vm0 = vcmask (!%p201_p3), 392192   ;;  %vm277_vm1 = vcmask (!%p201_p3), 7168   ;;  %v2128_v31 = vmov (!%p201_p3), 0.0   ;;  %v304_v58 = vlaneseq (!%p201_p3) }
   0x7   : > { %204 = sbr.rel (%p201_p3) target bundleno = 602 (0x25a), region = 32  ;;  %v384_v12 = vsel (!%p201_p3), %vm382_vm0, %v290_v10, 0  ;;  %s2127_s26 = smov (!%p201_p3), 127   ;;  %465 = vmatprep.mubr.f32.mxu0 (!%p201_p3), %v2128_v31  ;;  %vm361_vm4 = vcmask (!%p201_p3), 1048568  }
   0x8   : > { %v2187_v14 = vand.u32 (!%p201_p3), 4294901760, %v384_v12  ;;  %s2129_s11 = smov (!%p201_p3), 126   ;;  %v305_v59 = vand.u32 (!%p201_p3), 127, %v304_v58 }
   0xa   : > { %v2198_v19 = vsub.f32 (!%p201_p3), %v384_v12, %v2187_v14  ;;  %vm306_vm2 = vcmp.lt.s32.totalorder (!%p201_p3), %v305_v59, 1  ;;  %vm337_vm3 = vcmp.lt.s32.totalorder (!%p201_p3), %v305_v59, 127 }
   0xc   : > { %v2202_v22 = vand.u32 (!%p201_p3), 4294901760, %v2198_v19 }
   0xe   : > { %s2538_s15 = smov (!%p245_p4, %s2116_s15), 1  ;;  %v469_v26 = vsub.f32 %v2198_v19, %v2202_v22 }
   0xf   : > { %s2073_s19 = smul.u32 48, %s2538_s15  ;;  %s1758_s27 = sshll.u32 %s2538_s15, 4 }
  0x10   : > { %s2207_s30 = scalar_lea.vmem %s2521_s3, %s1758_s27  ;;  %s2212_s7 = scalar_lea.vmem %s2522_s4, %s1758_s27  ;;  %v2239_v32 = vand.u32 4294901760, %v469_v26 }
  0x11   : > { %s252_s22 = scalar_lea.vmem %s2518_s0, %s2073_s19  ;;  %s262_s10 = scalar_lea.vmem %s2519_s1, %s1758_s27  ;;  %278 = vst.msk [vmem:[%s2207_s30] sm:$0xff] %vm277_vm1, %v2128_v31  ;;  %279 = vst.msk [vmem:[%s2207_s30 + $0x8] sm:$0xff] %vm277_vm1, %v2128_v31 }
  0x12   : > { %v283_v0 = vld [vmem:[%s252_s22 + $0x8] sm:$0xff]  ;;  %v282_v1 = vld [vmem:[%s252_s22] sm:$0xff]  ;;  %v285_v3 = vld [vmem:[%s252_s22 + $0x18] sm:$0xff]  ;;  %280 = vst.msk [vmem:[%s2212_s7] sm:$0xff] %vm277_vm1, %v2128_v31  ;;  %1821 = vmatprep.mubr.f32.mxu1 %v2239_v32 }
  0x13   : > { %v286_v2 = vld [vmem:[%s252_s22 + $0x20] sm:$0xff]  ;;  %296 = vrot.lane.b32.xlu1 %v283_v0, %s2126_s23  ;;  %292 = vrot.lane.b32.xlu0 %v282_v1, %s2126_s23  ;;  %v287_v4 = vld [vmem:[%s252_s22 + $0x28] sm:$0xff]  ;;  %v397_v6 = vand.u32 4294901760, %v283_v0  ;;  %v399_v8 = vand.u32 4294901760, %v282_v1  ;;  %v403_v9 = vand.u32 4294901760, %v285_v3 }
  0x14   : > { %v284_v5 = vld [vmem:[%s252_s22 + $0x10] sm:$0xff]  ;;  %v401_v7 = vand.u32 4294901760, %v286_v2  ;;  %v1043_v21 = vand.u32 4294901760, %v287_v4  ;;  %281 = vst.msk [vmem:[%s2212_s7 + $0x8] sm:$0xff] %vm277_vm1, %v2128_v31  ;;  %v289_v35 = vld [vmem:[%s262_s10 + $0x8] sm:$0xff]  ;;  %v288_v36 = vld [vmem:[%s262_s10] sm:$0xff] }
  0x15   : > { %v2185_v13 = vpack.c.bf16 %v403_v9, %v399_v8  ;;  %v2189_v15 = vsub.f32 %v283_v0, %v397_v6  ;;  %v2193_v17 = vsub.f32 %v282_v1, %v399_v8  ;;  %v2195_v18 = vsub.f32 %v285_v3, %v403_v9 }
  0x16   : > { %v2182_v11 = vpack.c.bf16 %v401_v7, %v397_v6  ;;  %v2191_v16 = vsub.f32 %v286_v2, %v401_v7  ;;  %v1040_v20 = vand.u32 4294901760, %v284_v5  ;;  %v1147_v42 = vsub.f32 %v287_v4, %v1043_v21  ;;  %v291_v7 = vld [vmem:[%s2520_s2 + $0x8] sm:$0xff] }
  0x17   : > { %298 = vrot.lane.b32.xlu1 %v286_v2, %s2126_s23  ;;  %294 = vrot.lane.b32.xlu0 %v285_v3, %s2126_s23  ;;  %v514_v24 = vand.u32 4294901760, %v2189_v15  ;;  %v520_v27 = vand.u32 4294901760, %v2193_v17  ;;  %v532_v28 = vand.u32 4294901760, %v2195_v18  ;;  %v1929_v53 = vpack.c.bf16 %v2195_v18, %v2193_v17 }
  0x18   : > { %v2214_v23 = vpack.c.bf16 %v1043_v21, %v1040_v20  ;;  %v526_v25 = vand.u32 4294901760, %v2191_v16  ;;  %v1140_v41 = vsub.f32 %v284_v5, %v1040_v20  ;;  %v1148_v46 = vand.u32 4294901760, %v1147_v42 }
  0x19   : > { %v515_v29 = vsub.f32 %v2189_v15, %v514_v24  ;;  %v521_v33 = vsub.f32 %v2193_v17, %v520_v27  ;;  %v533_v34 = vsub.f32 %v2195_v18, %v532_v28  ;;  %v1927_v52 = vpack.c.bf16 %v2191_v16, %v2189_v15 }
  0x1a   : > { %v527_v30 = vsub.f32 %v2191_v16, %v526_v25  ;;  %v1141_v45 = vand.u32 4294901760, %v1140_v41  ;;  %v1149_v48 = vsub.f32 %v1147_v42, %v1148_v46  ;;  %v2255_v54 = vpack.c.bf16 %v1147_v42, %v1140_v41 }
  0x1b   : > { %302 = vrot.lane.b32.xlu1 %v287_v4, %s2126_s23  ;;  %300 = vrot.lane.b32.xlu0 %v284_v5, %s2126_s23  ;;  %v516_v37 = vand.u32 4294901760, %v515_v29  ;;  %v522_v39 = vand.u32 4294901760, %v521_v33  ;;  %v534_v40 = vand.u32 4294901760, %v533_v34  ;;  %v2257_v55 = vpack.c.bf16 %v526_v25, %v514_v24 }
  0x1c   : > { %v528_v38 = vand.u32 4294901760, %v527_v30  ;;  %v1142_v47 = vsub.f32 %v1140_v41, %v1141_v45  ;;  %v1150_v50 = vand.u32 4294901760, %v1149_v48  ;;  %v2259_v56 = vpack.c.bf16 %v532_v28, %v520_v27 }
  0x1d   : > { %v2247_v44 = vpack.c.bf16 %v534_v40, %v522_v39  ;;  %v2261_v57 = vpack.c.bf16 %v1148_v46, %v1141_v45  ;;  %v387_v24 = vsel %vm382_vm0, %v291_v7, 0 }
  0x1e   : > { %v2245_v43 = vpack.c.bf16 %v528_v38, %v516_v37  ;;  %v1143_v49 = vand.u32 4294901760, %v1142_v47  ;;  %v2281_v28 = vand.u32 4294901760, %v387_v24 }
  0x1f   : > { %331 = vrot.lane.b32.xlu1 %v286_v2, %s2127_s26  ;;  %329 = vrot.lane.b32.xlu0 %v283_v0, %s2127_s26 }
  0x20   : > { %v2249_v51 = vpack.c.bf16 %v1150_v50, %v1143_v49  ;;  %v2292_v40 = vsub.f32 %v387_v24, %v2281_v28 }
  0x23   : > { %335 = vrot.lane.b32.xlu1 %v287_v4, %s2127_s26  ;;  %333 = vrot.lane.b32.xlu0 %v284_v5, %s2127_s26 }
  0x27   : > { %327 = vrot.lane.b32.xlu1 %v285_v3, %s2127_s26  ;;  %325 = vrot.lane.b32.xlu0 %v282_v1, %s2127_s26 }
  0x2b   : > { %357 = vrot.lane.b32.xlu1 %v289_v35, %s2129_s11  ;;  %355 = vrot.lane.b32.xlu0 %v288_v36, %s2129_s11 }
  0x85   : > { %v297_v60 = vpop.permute.xlu1 %296  ;;  %v293_v61 = vpop.permute.xlu0 %292 }
  0x86   : > { %v309_v62 = vsel %vm306_vm2, %v293_v61, %v297_v60 }
  0x87   : > { %v389_v2 = vand.u32 4294901760, %v309_v62 }
  0x89   : > { %v299_v63 = vpop.permute.xlu1 %298  ;;  %v295_v0 = vpop.permute.xlu0 %294  ;;  %v2286_v34 = vsub.f32 %v309_v62, %v389_v2 }
  0x8a   : > { %v310_v1 = vsel %vm306_vm2, %v295_v0, %v299_v63 }
  0x8b   : > { %v393_v3 = vand.u32 4294901760, %v310_v1  ;;  %v490_v50 = vand.u32 4294901760, %v2286_v34 }
  0x8d   : > { %v303_v4 = vpop.permute.xlu1 %302  ;;  %v301_v5 = vpop.permute.xlu0 %300  ;;  %v2265_v6 = vpack.c.bf16 %v393_v3, %v389_v2  ;;  %v2283_v29 = vsub.f32 %v310_v1, %v393_v3 }
  0x8e   : > { %v308_v8 = vsel %vm306_vm2, %v299_v63, %v303_v4  ;;  %v312_v9 = vsel %vm306_vm2, %v303_v4, %v295_v0  ;;  %v307_v10 = vsel %vm306_vm2, %v297_v60, %v301_v5  ;;  %v311_v12 = vsel %vm306_vm2, %v301_v5, %v293_v61 }
  0x8f   : > { %316 = vst [vmem:[#allocation2 + $0x18] sm:$0xff] %v312_v9  ;;  %313 = vst [vmem:[#allocation2] sm:$0xff] %v311_v12  ;;  %1900 = vmatprep.subr.bf16.mxu0 %v2265_v6  ;;  %v1034_v20 = vand.u32 4294901760, %v307_v10  ;;  %v1037_v21 = vand.u32 4294901760, %v308_v8  ;;  %v502_v46 = vand.u32 4294901760, %v2283_v29 }
  0x90   : > { %352 = vst.msk [vmem:[#allocation2 + $0x18] sm:$0xff] %vm277_vm1, %v289_v35  ;;  %351 = vst.msk [vmem:[#allocation2] sm:$0xff] %vm277_vm1, %v288_v36 }
  0x91   : > { %v332_v25 = vpop.permute.xlu1 %331  ;;  %v330_v26 = vpop.permute.xlu0 %329  ;;  %v2278_v27 = vpack.c.bf16 %v1037_v21, %v1034_v20  ;;  %v2299_v58 = vsub.f32 %v307_v10, %v1034_v20  ;;  %v2301_v60 = vsub.f32 %v308_v8, %v1037_v21  ;;  %v503_v8 = vsub.f32 %v2283_v29, %v502_v46 }
  0x92   : > { %v2322_v20 = vand.u32 4294901760, %v2292_v40  ;;  %v491_v21 = vsub.f32 %v2286_v34, %v490_v50  ;;  %v1947_v17 = vpack.c.bf16 %v502_v46, %v490_v50 }
  0x93   : > { %1972 = vmatprep.subr.bf16.mxu1 %v2278_v27  ;;  %v2524_v24 = vand.u32 4294901760, %v2299_v58 }
  0x94   : > { %1974 = vmatpush3.bf16.msra.mxu1 %v2278_v27 }
  0x95   : > { %v336_v30 = vpop.permute.xlu1 %335  ;;  %v334_v33 = vpop.permute.xlu0 %333  ;;  %1976 = vmatprep.subr.bf16.mxu1 %v2214_v23 }
  0x96   : > { %v339_v35 = vsel %vm337_vm3, %v332_v25, %v336_v30  ;;  %v338_v36 = vsel %vm337_vm3, %v330_v26, %v334_v33 }
  0x97   : > { %v364_v37 = vld [vmem:[#allocation2] sm:$0xff]  ;;  %v367_v38 = vld [vmem:[#allocation2 + $0x18] sm:$0xff]  ;;  %v405_v39 = vand.u32 4294901760, %v338_v36  ;;  %v409_v45 = vand.u32 4294901760, %v339_v35 }
  0x98   : > { %v391_v41 = vand.u32 4294901760, %v364_v37  ;;  %v395_v42 = vand.u32 4294901760, %v367_v38  ;;  %1978 = vmatpush3.bf16.msra.mxu1 %v2214_v23 }
  0x99   : > { %v328_v47 = vpop.permute.xlu1 %327  ;;  %v326_v48 = vpop.permute.xlu0 %325  ;;  %v2296_v49 = vsub.f32 %v338_v36, %v405_v39  ;;  %v2313_v5 = vsub.f32 %v339_v35, %v409_v45 }
  0x9a   : > { %v341_v61 = vsel %vm337_vm3, %v328_v47, %v332_v25  ;;  %v343_v62 = vsel %vm337_vm3, %v336_v30, %v328_v47  ;;  %v340_v63 = vsel %vm337_vm3, %v326_v48, %v330_v26  ;;  %v342_v0 = vsel %vm337_vm3, %v334_v33, %v326_v48 }
  0x9b   : > { %349 = vst [vmem:[#allocation2 + $0x88] sm:$0xff] %v343_v62  ;;  %346 = vst [vmem:[#allocation2 + $0x70] sm:$0xff] %v342_v0  ;;  %v2307_v1 = vpack.c.bf16 %v395_v42, %v391_v41  ;;  %v2309_v2 = vsub.f32 %v364_v37, %v391_v41  ;;  %v2311_v3 = vsub.f32 %v367_v38, %v395_v42  ;;  %v407_v4 = vand.u32 4294901760, %v340_v63 }
  0x9c   : > { %v411_v7 = vand.u32 4294901760, %v341_v61  ;;  %v2523_v25 = vand.u32 4294901760, %v2301_v60  ;;  %v2525_v26 = vand.u32 4294901760, %v2296_v49  ;;  %v2343_v37 = vpack.c.bf16 %v409_v45, %v405_v39 }
  0x9d   : > { %v358_v9 = vpop.permute.xlu1 %357  ;;  %v356_v10 = vpop.permute.xlu0 %355  ;;  %1902 = vmatpush1.bf16.msra.mxu0 %v2307_v1  ;;  %v496_v59 = vand.u32 4294901760, %v2309_v2  ;;  %v2526_v12 = vand.u32 4294901760, %v2311_v3  ;;  %v2333_v30 = vsub.f32 %v340_v63, %v407_v4  ;;  %v504_v38 = vand.u32 4294901760, %v503_v8 }
  0x9e   : > { %363 = vst.msk [vmem:[#allocation2 + $0x88] sm:$0xff] %vm361_vm4, %v358_v9  ;;  %362 = vst.msk [vmem:[#allocation2 + $0x70] sm:$0xff] %vm361_vm4, %v356_v10  ;;  %1904 = vmatprep.subr.bf16.mxu0 %v2182_v11  ;;  %v2335_v33 = vsub.f32 %v341_v61, %v411_v7  ;;  %v2527_v41 = vand.u32 4294901760, %v2313_v5  ;;  %v492_v48 = vand.u32 4294901760, %v491_v21  ;;  %v1128_v61 = vsub.f32 %v2299_v58, %v2524_v24 }
  0x9f   : > { %v497_v35 = vsub.f32 %v2309_v2, %v496_v59  ;;  %v509_v36 = vsub.f32 %v2311_v3, %v2526_v12  ;;  %v1135_v62 = vsub.f32 %v2301_v60, %v2523_v25  ;;  %v480_v39 = vsub.f32 %v2292_v40, %v2322_v20 }
  0xa0   : > { %v2356_v45 = vpack.c.bf16 %v411_v7, %v407_v4  ;;  %v539_v63 = vsub.f32 %v2296_v49, %v2525_v26  ;;  %v544_v0 = vand.u32 4294901760, %v2333_v30  ;;  %v556_v8 = vand.u32 4294901760, %v2335_v33 }
  0xa1   : > { %1906 = vmatpush1.bf16.msra.mxu0 %v2185_v13  ;;  %v498_v42 = vand.u32 4294901760, %v497_v35  ;;  %v510_v47 = vand.u32 4294901760, %v509_v36  ;;  %v1911_v9 = vpack.c.bf16 %v504_v38, %v492_v48  ;;  %v551_v10 = vsub.f32 %v2313_v5, %v2527_v41 }
  0xa2   : > { %1908 = vmatprep.subr.bf16.mxu0 %v2343_v37  ;;  %v1129_v25 = vand.u32 4294901760, %v1128_v61  ;;  %v1136_v24 = vand.u32 4294901760, %v1135_v62  ;;  %v481_v26 = vand.u32 4294901760, %v480_v39  ;;  %v540_v12 = vand.u32 4294901760, %v539_v63 }
  0xa3   : > { %v1913_v36 = vpack.c.bf16 %v510_v47, %v498_v42  ;;  %v545_v38 = vsub.f32 %v2333_v30, %v544_v0  ;;  %v557_v48 = vsub.f32 %v2335_v33, %v556_v8  ;;  %v552_v42 = vand.u32 4294901760, %v551_v10 }
  0xa4   : > { %v1983_v61 = vpack.c.bf16 %v1136_v24, %v1129_v25  ;;  %v1933_v15 = vpack.c.bf16 %v2335_v33, %v2333_v30  ;;  %v2528_v18 = vand.u32 4294901760, %v2311_v3 }
  0xa5   : > { %1910 = vmatpush1.bf16.msra.mxu0 %v2356_v45  ;;  %v378_v21 = vld [vmem:[#allocation2 + $0x70] sm:$0xff]  ;;  %v381_v35 = vld [vmem:[#allocation2 + $0x88] sm:$0xff]  ;;  %v558_v63 = vand.u32 4294901760, %v557_v48  ;;  %v1919_v10 = vpack.c.bf16 %v552_v42, %v540_v12  ;;  %v1923_v12 = vpack.c.bf16 %v2283_v29, %v2286_v34  ;;  %v2532_v29 = vand.u32 4294901760, %v2313_v5 }
  0xa6   : > { %1912 = vmatprep.subr.bf16.mxu0 %v1911_v9  ;;  %v1046_v4 = vand.u32 4294901760, %v378_v21  ;;  %v1049_v7 = vand.u32 4294901760, %v381_v35 }
  0xa8   : > { %v2373_v41 = vpack.c.bf16 %v1049_v7, %v1046_v4  ;;  %471 = vmatmul.mubr.f32.vlgmr.msra.gmra.mrb[0].mxu0 %v2239_v32  ;;  %v2376_v47 = vsub.f32 %v378_v21, %v1046_v4  ;;  %v2378_v9 = vsub.f32 %v381_v35, %v1049_v7  ;;  %v546_v32 = vand.u32 4294901760, %v545_v38  ;;  %v1602_v7 = vld [vmem:[%s2212_s7 + $0x8] sm:$0xff] }
  0xa9   : > { %1914 = vmatpush1.bf16.msra.mxu0 %v1913_v36  ;;  %476 = vmatprep.mubr.f32.mxu0 %v2128_v31  ;;  %v1925_v36 = vpack.c.bf16 %v2311_v3, %v2309_v2  ;;  %v1931_v4 = vpack.c.bf16 %v2313_v5, %v2296_v49 }
  0xaa   : > { %1980 = vmatprep.subr.bf16.mxu1 %v2373_v41  ;;  %1916 = vmatprep.subr.bf16.mxu0 %v2245_v43  ;;  %v1155_v62 = vand.u32 4294901760, %v2376_v47  ;;  %v1162_v39 = vand.u32 4294901760, %v2378_v9  ;;  %v1921_v35 = vpack.c.bf16 %v558_v63, %v546_v32  ;;  %v2003_v16 = vpack.c.bf16 %v2378_v9, %v2376_v47 }
  0xab   : > { %1982 = vmatpush3.bf16.msra.mxu1 %v2373_v41 }
  0xac   : > { %1984 = vmatprep.subr.bf16.mxu1 %v1983_v61  ;;  %482 = vmatmul.mubr.f32.gmra.mrb[2].mxu0 %v481_v26  ;;  %v1156_v21 = vsub.f32 %v2376_v47, %v1155_v62  ;;  %v1163_v24 = vsub.f32 %v2378_v9, %v1162_v39 }
  0xad   : > { %1918 = vmatpush1.bf16.msra.mxu0 %v2247_v44  ;;  %612 = vmatprep.mubr.f32.mxu0 %v2128_v31 }
  0xae   : > { %1822 = vmatmul.mubr.f32.vlgmr.msra.gmra.mrb[0].mxu1 %v481_v26  ;;  %1920 = vmatprep.subr.bf16.mxu0 %v1919_v10  ;;  %v1157_v43 = vand.u32 4294901760, %v1156_v21  ;;  %v1164_v25 = vand.u32 4294901760, %v1163_v24  ;;  %v1995_v26 = vpack.c.bf16 %v2301_v60, %v2299_v58 }
  0xaf   : > { %1986 = vmatpush3.bf16.msra.mxu1 %v1983_v61  ;;  %1836 = vmatprep.mubr.f32.mxu1 %v2187_v14 }
  0xb0   : > { %1988 = vmatprep.subr.bf16.mxu1 %v2249_v51  ;;  %v1991_v44 = vpack.c.bf16 %v1164_v25, %v1157_v43 }
  0xb1   : > { %1922 = vmatpush1.bf16.msra.mxu0 %v1921_v35 }
  0xb2   : > { %1924 = vmatprep.subr.bf16.mxu0 %v1923_v12 }
  0xb3   : > { %1990 = vmatpush3.bf16.msra.mxu1 %v2249_v51  ;;  %v2529_v51 = vand.u32 4294901760, %v2299_v58 }
  0xb4   : > { %1992 = vmatprep.subr.bf16.mxu1 %v1991_v44  ;;  %614 = vmatmul.mubr.f32.vlgmr.msra.gmra.mrb[0].mxu0 %v2187_v14 }
  0xb5   : > { %1926 = vmatpush1.bf16.msra.mxu0 %v1925_v36  ;;  %619 = vmatprep.mubr.f32.mxu0 %v2128_v31 }
  0xb6   : > { %1928 = vmatprep.subr.bf16.mxu0 %v1927_v52  ;;  %v2530_v52 = vand.u32 4294901760, %v2301_v60 }
  0xb7   : > { %1994 = vmatpush3.bf16.msra.mxu1 %v1991_v44 }
  0xb8   : > { %1996 = vmatprep.subr.bf16.mxu1 %v1995_v26  ;;  %621 = vmatmul.mubr.f32.gmra.mrb[2].mxu0 %v2281_v28 }
  0xb9   : > { %1930 = vmatpush1.bf16.msra.mxu0 %v1929_v53  ;;  %715 = vmatprep.mubr.f32.mxu0 %v2128_v31  ;;  %v2019_v53 = vpack.c.bf16 %v2530_v52, %v2529_v51 }
  0xba   : > { %1837 = vmatmul.mubr.f32.vlgmr.msra.gmra.mrb[0].mxu1 %v2281_v28  ;;  %1932 = vmatprep.subr.bf16.mxu0 %v1931_v4 }
  0xbb   : > { %1998 = vmatpush3.bf16.msra.mxu1 %v1995_v26  ;;  %1851 = vmatprep.mubr.f32.mxu1 %v2198_v19 }
  0xbc   : > { %2000 = vmatprep.subr.bf16.mxu1 %v2255_v54 }
  0xbd   : > { %1934 = vmatpush1.bf16.msra.mxu0 %v1933_v15 }
  0xbe   : > { %1936 = vmatprep.subr.bf16.mxu0 %v2265_v6 }
  0xbf   : > { %2002 = vmatpush3.bf16.msra.mxu1 %v2255_v54  ;;  %v2531_v54 = vand.u32 4294901760, %v2296_v49 }
  0xc0   : > { %2004 = vmatprep.subr.bf16.mxu1 %v2003_v16  ;;  %718 = vmatmul.mubr.f32.vlgmr.msra.gmra.mrb[0].mxu0 %v2198_v19  ;;  %v1949_v19 = vpack.c.bf16 %v2528_v18, %v496_v59  ;;  %v1587_v59 = vld [vmem:[%s2207_s30] sm:$0xff] }
  0xc1   : > { %1938 = vmatpush1.bf16.msra.mxu0 %v2307_v1  ;;  %723 = vmatprep.mubr.f32.mxu0 %v2128_v31  ;;  %v1955_v34 = vpack.c.bf16 %v2532_v29, %v2531_v54 }
  0xc2   : > { %1940 = vmatprep.subr.bf16.mxu0 %v2182_v11 }
  0xc3   : > { %2006 = vmatpush3.bf16.msra.mxu1 %v2003_v16 }
  0xc4   : > { %2008 = vmatprep.subr.bf16.mxu1 %v2278_v27  ;;  %726 = vmatmul.mubr.f32.gmra.mrb[2].mxu0 %v2292_v40 }
  0xc5   : > { %1942 = vmatpush1.bf16.msra.mxu0 %v2185_v13  ;;  %808 = vmatprep.mubr.f32.mxu0 %v2128_v31 }
  0xc6   : > { %1852 = vmatmul.mubr.f32.vlgmr.msra.gmra.mrb[0].mxu1 %v2292_v40  ;;  %1944 = vmatprep.subr.bf16.mxu0 %v2343_v37 }
  0xc7   : > { %2010 = vmatpush3.bf16.msra.mxu1 %v2278_v27  ;;  %1866 = vmatprep.mubr.f32.mxu1 %v2202_v22 }
  0xc8   : > { %2012 = vmatprep.subr.bf16.mxu1 %v2214_v23 }
  0xc9   : > { %1946 = vmatpush1.bf16.msra.mxu0 %v2356_v45 }
  0xca   : > { %1948 = vmatprep.subr.bf16.mxu0 %v1947_v17 }
  0xcb   : > { %2014 = vmatpush3.bf16.msra.mxu1 %v2214_v23 }
  0xcc   : > { %2016 = vmatprep.subr.bf16.mxu1 %v2373_v41  ;;  %812 = vmatmul.mubr.f32.vlgmr.msra.gmra.mrb[0].mxu0 %v2202_v22  ;;  %v1957_v22 = vpack.c.bf16 %v556_v8, %v544_v0 }
  0xcd   : > { %1950 = vmatpush1.bf16.msra.mxu0 %v1949_v19  ;;  %817 = vmatprep.mubr.f32.mxu0 %v2128_v31 }
  0xce   : > { %1952 = vmatprep.subr.bf16.mxu0 %v2257_v55  ;;  %v2027_v55 = vpack.c.bf16 %v1162_v39, %v1155_v62 }
  0xcf   : > { %2018 = vmatpush3.bf16.msra.mxu1 %v2373_v41 }
  0xd0   : > { %2020 = vmatprep.subr.bf16.mxu1 %v2019_v53  ;;  %821 = vmatmul.mubr.f32.gmra.mrb[2].mxu0 %v2322_v20 }
  0xd1   : > { %1954 = vmatpush1.bf16.msra.mxu0 %v2259_v56  ;;  %927 = vmatprep.mubr.f32.mxu0 %v2128_v31 }
  0xd2   : > { %1867 = vmatmul.mubr.f32.vlgmr.msra.gmra.mrb[0].mxu1 %v2322_v20  ;;  %1956 = vmatprep.subr.bf16.mxu0 %v1955_v34  ;;  %v1588_v20 = vld [vmem:[%s2207_s30 + $0x8] sm:$0xff] }
  0xd3   : > { %2022 = vmatpush3.bf16.msra.mxu1 %v2019_v53  ;;  %1881 = vmatprep.mubr.f32.mxu1 %v2187_v14 }
  0xd4   : > { %2024 = vmatprep.subr.bf16.mxu1 %v2261_v57 }
  0xd5   : > { %1958 = vmatpush1.bf16.msra.mxu0 %v1957_v22 }
  0xd6   : > { %1960 = vmatprep.subr.bf16.mxu0 %v2265_v6 }
  0xd7   : > { %2026 = vmatpush3.bf16.msra.mxu1 %v2261_v57 }
  0xd8   : > { %2028 = vmatprep.subr.bf16.mxu1 %v2027_v55  ;;  %929 = vmatmul.mubr.f32.vlgmr.msra.gmra.mrb[0].mxu0 %v2187_v14 }
  0xd9   : > { %1962 = vmatpush1.bf16.msra.mxu0 %v2307_v1  ;;  %934 = vmatprep.mubr.f32.mxu0 %v2128_v31 }
  0xda   : > { %1964 = vmatprep.subr.bf16.mxu0 %v2182_v11 }
  0xdb   : > { %2030 = vmatpush3.bf16.msra.mxu1 %v2027_v55 }
  0xdc   : > { %2032 = vmatprep.subr.bf16.mxu1 %v2278_v27  ;;  %936 = vmatmul.mubr.f32.gmra.mrb[2].mxu0 %v2281_v28 }
  0xdd   : > { %1966 = vmatpush1.bf16.msra.mxu0 %v2185_v13  ;;  %1018 = vmatprep.mubr.f32.mxu0 %v2128_v31 }
  0xde   : > { %1882 = vmatmul.mubr.f32.vlgmr.msra.gmra.mrb[0].mxu1 %v2281_v28  ;;  %1968 = vmatprep.subr.bf16.mxu0 %v2343_v37 }
  0xdf   : > { %2034 = vmatpush3.bf16.msra.mxu1 %v2278_v27  ;;  %1896 = vmatprep.mubr.f32.mxu1 %v2187_v14 }
  0xe0   : > { %2036 = vmatprep.subr.bf16.mxu1 %v2214_v23 }
  0xe1   : > { %1970 = vmatpush1.bf16.msra.mxu0 %v2356_v45  ;;  %v1601_v45 = vld [vmem:[%s2212_s7] sm:$0xff] }
  0xe3   : > { %2038 = vmatpush3.bf16.msra.mxu1 %v2214_v23 }
  0xe4   : > { %2040 = vmatprep.subr.bf16.mxu1 %v2373_v41  ;;  %1020 = vmatmul.mubr.f32.vlgmr.msra.gmra.mrb[0].mxu0 %v2187_v14 }
  0xe5   : > { %1025 = vmatprep.mubr.f32.mxu0 %v2128_v31 }
  0xe7   : > { %2042 = vmatpush3.bf16.msra.mxu1 %v2373_v41 }
  0xe8   : > { %1027 = vmatmul.mubr.f32.gmra.mrb[2].mxu0 %v2281_v28 }
  0xea   : > { %1897 = vmatmul.mubr.f32.vlgmr.msra.gmra.mrb[0].mxu1 %v2281_v28 }
 0x1b7   : > { %v1021_v11 = vpop.f32.mrb[0].mxu0 }
 0x1b8   : > { %v1603_v13 = vmul.f32 %v1021_v11, %v1021_v11  ;;  %v1023_v56 = vpop.f32.mrb[1].mxu0 }
 0x1b9   : > { %v1589_v57 = vadd.f32 %v1023_v56, %v1021_v11  ;;  %v1604_v6 = vmul.f32 %v1023_v56, %v1023_v56 }
 0x1bb   : > { %v1028_v27 = vpop.f32.mrb[2].mxu0  ;;  %v1609_v40 = vadd.f32 %v1604_v6, %v1603_v13 }
 0x1bc   : > { %v1606_v23 = vmul.f32 %v1028_v27, %v1028_v27  ;;  %v1030_v46 = vpop.f32.mrb[3].mxu0 }
 0x1bd   : > { %v1898_v49 = vpop.f32.mrb[0].mxu1  ;;  %v1593_v14 = vadd.f32 %v1030_v46, %v1028_v27  ;;  %v1607_v31 = vmul.f32 %v1030_v46, %v1030_v46 }
 0x1be   : > { %v1608_v50 = vmul.f32 %v1898_v49, %v1898_v49  ;;  %v1577_v58 = vpop.f32.mrb[1].mxu1 }
 0x1bf   : > { %v1613_v60 = vadd.f32 %v1607_v31, %v1606_v23  ;;  %v1590_v1 = vadd.f32 %v1589_v57, %v1577_v58  ;;  %v1605_v28 = vmul.f32 %v1577_v58, %v1577_v58  ;;  %v1594_v2 = vadd.f32 %v1898_v49, %v1593_v14 }
 0x1c1   : > { %1591 = vadd.xlane.f32.xlu0 %v1590_v1  ;;  %1595 = vadd.xlane.f32.xlu1 %v1594_v2  ;;  %v1610_v3 = vadd.f32 %v1609_v40, %v1605_v28  ;;  %v1614_v5 = vadd.f32 %v1613_v60, %v1608_v50 }
 0x1c5   : > { %1611 = vadd.xlane.f32.xlu0 %v1610_v3 }
 0x1c9   : > { %1615 = vadd.xlane.f32.xlu0 %v1614_v5 }
 0x24e   : > { %v1592_v30 = vpop.xlane.xlu0 %1591  ;;  %v1596_v33 = vpop.xlane.xlu1 %1595 }
 0x24f   : > { %v1597_v37 = vadd.f32 %v1592_v30, %v1587_v59  ;;  %v1598_v41 = vadd.f32 %v1596_v33, %v1588_v20 }
 0x251   : > { %1599 = vst.msk [vmem:[%s2207_s30] sm:$0xff] %vm277_vm1, %v1597_v37  ;;  %1600 = vst.msk [vmem:[%s2207_s30 + $0x8] sm:$0xff] %vm277_vm1, %v1598_v41 }
 0x252   : > { %v1612_v0 = vpop.xlane.xlu0 %1611 }
 0x253   : > { %v1617_v8 = vadd.f32 %v1612_v0, %v1601_v45 }
 0x255   : > { %1619 = vst.msk [vmem:[%s2212_s7] sm:$0xff] %vm277_vm1, %v1617_v8 }
 0x256   : > { %v1616_v38 = vpop.xlane.xlu0 %1615 }
 0x257   : > { %v1618_v48 = vadd.f32 %v1616_v38, %v1602_v7 }
 0x259   : > { %1620 = vst.msk [vmem:[%s2212_s7 + $0x8] sm:$0xff] %vm277_vm1, %v1618_v48 }
 0x25a PF: > { %s15_s17 = sadd.s32 1, %s2124_s17   ;;  %s2533_s15 = smov %s2120_s16 }
 0x25b   : > { %p12_p5 = scmp.ge.s32.totalorder %s15_s17, 4   ;;  %s2534_s16 = smov %s2536_s18 }
 0x25d   :  { %14 = sbr.rel (!%p12_p5) target bundleno = 2 (0x2), region = 81 }

// kernel: residual_block_pallas.4
= control target key start
LH: loop header
LB: loop body
LE: loop exit
PB: predicated region body
PF: predicated region fallthrough
CT: control target
= control target key end

     0   :  { %s4116_s30 = smov 0   ;;  %s4118_s10 = smov 0   ;;  %s4871_s0 = inlined_call_operand.vmem [shape: f32[2,16,384], index: 0, kind: input, shape index: {}]   ;;  %s4872_s1 = inlined_call_operand.vmem [shape: f32[2,1,16,2], index: 1, kind: input, shape index: {}, may-alias: {1,2}]   ;;  %s4873_s2 = inlined_call_operand.vmem [shape: f32[2,1,16,2], index: 2, kind: input, shape index: {}, may-alias: {1,2}]   ;;  %s4874_s3 = inlined_call_operand.vmem [shape: f32[16,1], index: 3, kind: input, shape index: {}]   ;;  %s4875_s4 = inlined_call_operand.vmem [shape: f32[16,1], index: 4, kind: input, shape index: {}]   ;;  %s4876_s5 = inlined_call_operand.vmem [shape: f32[16,48], index: 5, kind: input, shape index: {}]   ;;  %s4877_s6 = inlined_call_operand.vmem [shape: f32[16,48], index: 6, kind: input, shape index: {}]   ;;  %s4878_s7 = inlined_call_operand.vmem [shape: f32[2,16,384], index: 7, kind: output, shape index: {0}]   ;;  %s4879_s8 = inlined_call_operand.vmem [shape: f32[2,16,1], index: 8, kind: output, shape index: {1}]   ;;  %s4880_s9 = inlined_call_operand.vmem [shape: f32[2,16,1], index: 9, kind: output, shape index: {2}]  }
   0x1   :  { %s4120_s11 = smov 0  }
   0x2 LB: > { %s32_s12 = sadd.s32 1, %s4055_s10  ;;  %p3364_p0 = scmp.ge.s32.totalorder %s4059_s11, 1  ;;  %s4059_s11 = sphi %s4120_s11, %s20_s11   ;;  %s4055_s10 = sphi %s4118_s10, %s4904_s10   ;;  %s4051_s30 = sphi %s4116_s30, %s4903_s30  }
   0x3   : > { %p34_p1 = scmp.ge.s32.totalorder %s32_s12, 2  ;;  %p345_p2 = scmp.lt.s32.totalorder %s4059_s11, 3 }
   0x5   : > { %s4906_s12 = smov (%p34_p1, %s32_s12), 0  ;;  %p346_p3 = pnand %p3364_p0, %p345_p2 }
   0x6   : > { %p418_p4 = scmp.lt.s32.totalorder (!%p346_p3), %s4051_s30, 1  ;;  %s4061_s17 = smov (!%p346_p3), 1   ;;  %v482_v10 = vld [vmem:[%s4876_s5] sm:$0xff] (!%p346_p3)  ;;  %vm574_vm0 = vcmask (!%p346_p3), 392192   ;;  %v4063_v36 = vmov (!%p346_p3), 0.0   ;;  %v1780_v58 = vld [vmem:[%s4874_s3 + $0x8] sm:$0xff] (!%p346_p3)  ;;  %v496_v63 = vlaneseq (!%p346_p3) }
   0x7   : > { %349 = sbr.rel (%p346_p3) target bundleno = 1032 (0x408), region = 48  ;;  %v576_v12 = vsel (!%p346_p3), %vm574_vm0, %v482_v10, 0  ;;  %s4062_s20 = smov (!%p346_p3), 127   ;;  %657 = vmatprep.mubr.f32.mxu0 (!%p346_p3), %v4063_v36  ;;  %v1779_v59 = vld [vmem:[%s4874_s3] sm:$0xff] (!%p346_p3)  ;;  %v4065_v60 = vmov (!%p346_p3), 0   ;;  %v1798_v62 = vld [vmem:[%s4875_s4 + $0x8] sm:$0xff] (!%p346_p3) }
   0x8   : > { %v4158_v14 = vand.u32 (!%p346_p3), 4294901760, %v576_v12  ;;  %s4064_s25 = smov (!%p346_p3), 126   ;;  %4036 = vset.pattern.permute.xlu1 (!%p346_p3), %v4065_v60  ;;  %4035 = vset.pattern.permute.xlu0 (!%p346_p3), %v4065_v60  ;;  %v1797_v61 = vld [vmem:[%s4875_s4] sm:$0xff] (!%p346_p3)  ;;  %vm469_vm2 = vcmask (!%p346_p3), 7168   ;;  %vm553_vm4 = vcmask (!%p346_p3), 1048568  }
   0xa   : > { %v4169_v19 = vsub.f32 (!%p346_p3), %v576_v12, %v4158_v14 }
   0xc   : > { %v4177_v22 = vand.u32 (!%p346_p3), 4294901760, %v4169_v19 }
   0xe   : > { %s4908_s30 = smov (!%p418_p4, %s4051_s30), 1  ;;  %v661_v26 = vsub.f32 %v4169_v19, %v4177_v22 }
   0xf   : > { %s4005_s13 = smul.u32 48, %s4908_s30  ;;  %s4172_s21 = sshll.u32 %s4908_s30, 4 }
  0x10   : > { %s435_s24 = scalar_lea.vmem %s4872_s1, %s4172_s21  ;;  %v4195_v31 = vand.u32 4294901760, %v661_v26  ;;  %s444_s27 = scalar_lea.vmem %s4873_s2, %s4172_s21 }
  0x11   : > { %s425_s16 = scalar_lea.vmem %s4871_s0, %s4005_s13  ;;  %v4199_v34 = vld [vmem:[%s435_s24 + $0x8] sm:$0xff]  ;;  %v4201_v35 = vld [vmem:[%s435_s24] sm:$0xff]  ;;  %s4833_s14 = scalar_lea.vmem %s4879_s8, %s4172_s21 }
  0x12   : > { %v475_v0 = vld [vmem:[%s425_s16 + $0x8] sm:$0xff]  ;;  %v474_v1 = vld [vmem:[%s425_s16] sm:$0xff]  ;;  %v477_v3 = vld [vmem:[%s425_s16 + $0x18] sm:$0xff]  ;;  %3489 = vmatprep.mubr.f32.mxu1 %v4195_v31  ;;  %470 = vst.msk [vmem:[%s4833_s14] sm:$0xff] %vm469_vm2, %v4063_v36  ;;  %s453_s18 = scalar_lea.vmem %s4878_s7, %s4005_s13  ;;  %s464_s19 = scalar_lea.vmem %s4880_s9, %s4172_s21 }
  0x13   : > { %v478_v2 = vld [vmem:[%s425_s16 + $0x20] sm:$0xff]  ;;  %488 = vrot.lane.b32.xlu1 %v475_v0, %s4061_s17  ;;  %484 = vrot.lane.b32.xlu0 %v474_v1, %s4061_s17  ;;  %v479_v4 = vld [vmem:[%s425_s16 + $0x28] sm:$0xff]  ;;  %v589_v6 = vand.u32 4294901760, %v475_v0  ;;  %v591_v8 = vand.u32 4294901760, %v474_v1  ;;  %v595_v9 = vand.u32 4294901760, %v477_v3 }
  0x14   : > { %v476_v5 = vld [vmem:[%s425_s16 + $0x10] sm:$0xff]  ;;  %v593_v7 = vand.u32 4294901760, %v478_v2  ;;  %v1235_v21 = vand.u32 4294901760, %v479_v4  ;;  %471 = vst.msk [vmem:[%s4833_s14 + $0x8] sm:$0xff] %vm469_vm2, %v4063_v36  ;;  %473 = vst.msk [vmem:[%s464_s19 + $0x8] sm:$0xff] %vm469_vm2, %v4063_v36 }
  0x15   : > { %v4156_v13 = vpack.c.bf16 %v595_v9, %v591_v8  ;;  %v4160_v15 = vsub.f32 %v475_v0, %v589_v6  ;;  %v4164_v17 = vsub.f32 %v474_v1, %v591_v8  ;;  %v4166_v18 = vsub.f32 %v477_v3, %v595_v9  ;;  %472 = vst.msk [vmem:[%s464_s19] sm:$0xff] %vm469_vm2, %v4063_v36 }
  0x16   : > { %v4151_v11 = vpack.c.bf16 %v593_v7, %v589_v6  ;;  %v4162_v16 = vsub.f32 %v478_v2, %v593_v7  ;;  %v1232_v20 = vand.u32 4294901760, %v476_v5  ;;  %v1339_v42 = vsub.f32 %v479_v4, %v1235_v21 }
  0x17   : > { %490 = vrot.lane.b32.xlu1 %v478_v2, %s4061_s17  ;;  %486 = vrot.lane.b32.xlu0 %v477_v3, %s4061_s17  ;;  %v706_v24 = vand.u32 4294901760, %v4160_v15  ;;  %v712_v27 = vand.u32 4294901760, %v4164_v17  ;;  %v724_v28 = vand.u32 4294901760, %v4166_v18  ;;  %v3687_v53 = vpack.c.bf16 %v4166_v18, %v4164_v17 }
  0x18   : > { %v4179_v23 = vpack.c.bf16 %v1235_v21, %v1232_v20  ;;  %v718_v25 = vand.u32 4294901760, %v4162_v16  ;;  %v1332_v41 = vsub.f32 %v476_v5, %v1232_v20  ;;  %v1340_v46 = vand.u32 4294901760, %v1339_v42  ;;  %v483_v20 = vld [vmem:[%s4876_s5 + $0x8] sm:$0xff] }
  0x19   : > { %v707_v29 = vsub.f32 %v4160_v15, %v706_v24  ;;  %v713_v32 = vsub.f32 %v4164_v17, %v712_v27  ;;  %v725_v33 = vsub.f32 %v4166_v18, %v724_v28  ;;  %v3685_v52 = vpack.c.bf16 %v4162_v16, %v4160_v15 }
  0x1a   : > { %v719_v30 = vsub.f32 %v4162_v16, %v718_v25  ;;  %v1333_v45 = vand.u32 4294901760, %v1332_v41  ;;  %v1341_v48 = vsub.f32 %v1339_v42, %v1340_v46  ;;  %v4219_v54 = vpack.c.bf16 %v1339_v42, %v1332_v41 }
  0x1b   : > { %494 = vrot.lane.b32.xlu1 %v479_v4, %s4061_s17  ;;  %492 = vrot.lane.b32.xlu0 %v476_v5, %s4061_s17  ;;  %v708_v37 = vand.u32 4294901760, %v707_v29  ;;  %v714_v39 = vand.u32 4294901760, %v713_v32  ;;  %v726_v40 = vand.u32 4294901760, %v725_v33  ;;  %v4221_v55 = vpack.c.bf16 %v718_v25, %v706_v24 }
  0x1c   : > { %v720_v38 = vand.u32 4294901760, %v719_v30  ;;  %v1334_v47 = vsub.f32 %v1332_v41, %v1333_v45  ;;  %v1342_v50 = vand.u32 4294901760, %v1341_v48  ;;  %v4223_v56 = vpack.c.bf16 %v724_v28, %v712_v27 }
  0x1d   : > { %v4211_v44 = vpack.c.bf16 %v726_v40, %v714_v39  ;;  %v4225_v57 = vpack.c.bf16 %v1340_v46, %v1333_v45  ;;  %v579_v29 = vsel %vm574_vm0, %v483_v20, 0 }
  0x1e   : > { %v4205_v43 = vpack.c.bf16 %v720_v38, %v708_v37  ;;  %v1335_v49 = vand.u32 4294901760, %v1334_v47  ;;  %v4269_v37 = vand.u32 4294901760, %v579_v29 }
  0x1f   : > { %523 = vrot.lane.b32.xlu1 %v478_v2, %s4062_s20  ;;  %521 = vrot.lane.b32.xlu0 %v475_v0, %s4062_s20  ;;  %v4239_v0 = vand.u32 127, %v496_v63 }
  0x20   : > { %v4213_v51 = vpack.c.bf16 %v1342_v50, %v1335_v49  ;;  %v4282_v47 = vsub.f32 %v579_v29, %v4269_v37 }
  0x21   : > { %vm498_vm1 = vcmp.lt.s32.totalorder %v4239_v0, 1  ;;  %vm529_vm3 = vcmp.lt.s32.totalorder %v4239_v0, 127 }
  0x23   : > { %527 = vrot.lane.b32.xlu1 %v479_v4, %s4062_s20  ;;  %525 = vrot.lane.b32.xlu0 %v476_v5, %s4062_s20 }
  0x27   : > { %519 = vrot.lane.b32.xlu1 %v477_v3, %s4062_s20  ;;  %517 = vrot.lane.b32.xlu0 %v474_v1, %s4062_s20 }
  0x2b   : > { %549 = vrot.lane.b32.xlu1 %v4199_v34, %s4064_s25  ;;  %547 = vrot.lane.b32.xlu0 %v4201_v35, %s4064_s25 }
  0x2f   : > { %1788 = vperm.xlu1 %4036, %v1780_v58   ;;  %1783 = vperm.xlu0 %4035, %v1779_v59  }
  0x33   : > { %1801 = vperm.xlu1 %4036, %v1797_v61   ;;  %1806 = vperm.xlu0 %4035, %v1798_v62  }
  0x85   : > { %v489_v1 = vpop.permute.xlu1 %488  ;;  %v485_v2 = vpop.permute.xlu0 %484 }
  0x86   : > { %v501_v3 = vsel %vm498_vm1, %v485_v2, %v489_v1 }
  0x87   : > { %v581_v7 = vand.u32 4294901760, %v501_v3 }
  0x89   : > { %v491_v4 = vpop.permute.xlu1 %490  ;;  %v487_v5 = vpop.permute.xlu0 %486  ;;  %v4274_v40 = vsub.f32 %v501_v3, %v581_v7 }
  0x8a   : > { %v502_v6 = vsel %vm498_vm1, %v487_v5, %v491_v4 }
  0x8b   : > { %v585_v8 = vand.u32 4294901760, %v502_v6  ;;  %v682_v62 = vand.u32 4294901760, %v4274_v40 }
  0x8d   : > { %v495_v9 = vpop.permute.xlu1 %494  ;;  %v493_v10 = vpop.permute.xlu0 %492  ;;  %v4246_v12 = vpack.c.bf16 %v585_v8, %v581_v7  ;;  %v4271_v38 = vsub.f32 %v502_v6, %v585_v8  ;;  %v683_v29 = vsub.f32 %v4274_v40, %v682_v62 }
  0x8e   : > { %v500_v21 = vsel %vm498_vm1, %v491_v4, %v495_v9  ;;  %v504_v24 = vsel %vm498_vm1, %v495_v9, %v487_v5  ;;  %v499_v25 = vsel %vm498_vm1, %v489_v1, %v493_v10  ;;  %v503_v26 = vsel %vm498_vm1, %v493_v10, %v485_v2 }
  0x8f   : > { %508 = vst [vmem:[#allocation2 + $0x18] sm:$0xff] %v504_v24  ;;  %505 = vst [vmem:[#allocation2] sm:$0xff] %v503_v26  ;;  %3658 = vmatprep.subr.bf16.mxu0 %v4246_v12  ;;  %v1226_v27 = vand.u32 4294901760, %v499_v25  ;;  %v1229_v28 = vand.u32 4294901760, %v500_v21  ;;  %v694_v58 = vand.u32 4294901760, %v4271_v38 }
  0x90   : > { %544 = vst.msk [vmem:[#allocation2 + $0x18] sm:$0xff] %vm469_vm2, %v4199_v34  ;;  %543 = vst.msk [vmem:[#allocation2] sm:$0xff] %vm469_vm2, %v4201_v35 }
  0x91   : > { %v524_v30 = vpop.permute.xlu1 %523  ;;  %v522_v32 = vpop.permute.xlu0 %521  ;;  %v4265_v33 = vpack.c.bf16 %v1229_v28, %v1226_v27  ;;  %v4289_v63 = vsub.f32 %v499_v25, %v1226_v27  ;;  %v4291_v1 = vsub.f32 %v500_v21, %v1229_v28  ;;  %v695_v21 = vsub.f32 %v4271_v38, %v694_v58 }
  0x92   : > { %v4316_v28 = vand.u32 4294901760, %v4282_v47  ;;  %v3705_v17 = vpack.c.bf16 %v694_v58, %v682_v62 }
  0x93   : > { %3730 = vmatprep.subr.bf16.mxu1 %v4265_v33 }
  0x94   : > { %3732 = vmatpush3.bf16.msra.mxu1 %v4265_v33 }
  0x95   : > { %v528_v34 = vpop.permute.xlu1 %527  ;;  %v526_v39 = vpop.permute.xlu0 %525  ;;  %3734 = vmatprep.subr.bf16.mxu1 %v4179_v23 }
  0x96   : > { %v531_v35 = vsel %vm529_vm3, %v524_v30, %v528_v34  ;;  %v530_v41 = vsel %vm529_vm3, %v522_v32, %v526_v39 }
  0x97   : > { %v556_v42 = vld [vmem:[#allocation2] sm:$0xff]  ;;  %v559_v45 = vld [vmem:[#allocation2 + $0x18] sm:$0xff]  ;;  %v597_v46 = vand.u32 4294901760, %v530_v41  ;;  %v601_v50 = vand.u32 4294901760, %v531_v35 }
  0x98   : > { %v583_v48 = vand.u32 4294901760, %v556_v42  ;;  %v587_v49 = vand.u32 4294901760, %v559_v45  ;;  %3736 = vmatpush3.bf16.msra.mxu1 %v4179_v23 }
  0x99   : > { %v520_v59 = vpop.permute.xlu1 %519  ;;  %v518_v60 = vpop.permute.xlu0 %517  ;;  %v4286_v61 = vsub.f32 %v530_v41, %v597_v46  ;;  %v4307_v10 = vsub.f32 %v531_v35, %v601_v50 }
  0x9a   : > { %v533_v2 = vsel %vm529_vm3, %v520_v59, %v524_v30  ;;  %v535_v3 = vsel %vm529_vm3, %v528_v34, %v520_v59  ;;  %v532_v4 = vsel %vm529_vm3, %v518_v60, %v522_v32  ;;  %v534_v5 = vsel %vm529_vm3, %v526_v39, %v518_v60 }
  0x9b   : > { %541 = vst [vmem:[#allocation2 + $0x88] sm:$0xff] %v535_v3  ;;  %538 = vst [vmem:[#allocation2 + $0x70] sm:$0xff] %v534_v5  ;;  %v4301_v6 = vpack.c.bf16 %v587_v49, %v583_v48  ;;  %v4303_v7 = vsub.f32 %v556_v42, %v583_v48  ;;  %v4305_v8 = vsub.f32 %v559_v45, %v587_v49  ;;  %v599_v9 = vand.u32 4294901760, %v532_v4 }
  0x9c   : > { %v603_v20 = vand.u32 4294901760, %v533_v2  ;;  %v4882_v30 = vand.u32 4294901760, %v4289_v63  ;;  %v4881_v32 = vand.u32 4294901760, %v4291_v1  ;;  %v4884_v34 = vand.u32 4294901760, %v4286_v61 }
  0x9d   : > { %v550_v24 = vpop.permute.xlu1 %549  ;;  %v548_v25 = vpop.permute.xlu0 %547  ;;  %3660 = vmatpush1.bf16.msra.mxu0 %v4301_v6  ;;  %v4885_v26 = vand.u32 4294901760, %v4303_v7  ;;  %v4883_v27 = vand.u32 4294901760, %v4305_v8  ;;  %v4327_v39 = vsub.f32 %v532_v4, %v599_v9  ;;  %v4337_v45 = vpack.c.bf16 %v601_v50, %v597_v46 }
  0x9e   : > { %555 = vst.msk [vmem:[#allocation2 + $0x88] sm:$0xff] %vm553_vm4, %v550_v24  ;;  %554 = vst.msk [vmem:[#allocation2 + $0x70] sm:$0xff] %vm553_vm4, %v548_v25  ;;  %3662 = vmatprep.subr.bf16.mxu0 %v4151_v11  ;;  %v4329_v35 = vsub.f32 %v533_v2, %v603_v20  ;;  %v696_v48 = vand.u32 4294901760, %v695_v21  ;;  %v4886_v49 = vand.u32 4294901760, %v4307_v10  ;;  %v684_v2 = vand.u32 4294901760, %v683_v29 }
  0x9f   : > { %v689_v41 = vsub.f32 %v4303_v7, %v4885_v26  ;;  %v701_v42 = vsub.f32 %v4305_v8, %v4883_v27  ;;  %v1320_v3 = vsub.f32 %v4289_v63, %v4882_v30  ;;  %v1327_v4 = vsub.f32 %v4291_v1, %v4881_v32 }
  0xa0   : > { %v672_v46 = vsub.f32 %v4282_v47, %v4316_v28  ;;  %v4350_v50 = vpack.c.bf16 %v603_v20, %v599_v9  ;;  %v731_v5 = vsub.f32 %v4286_v61, %v4884_v34  ;;  %v736_v21 = vand.u32 4294901760, %v4327_v39 }
  0xa1   : > { %3664 = vmatpush1.bf16.msra.mxu0 %v4156_v13  ;;  %v690_v59 = vand.u32 4294901760, %v689_v41  ;;  %v702_v60 = vand.u32 4294901760, %v701_v42  ;;  %v748_v24 = vand.u32 4294901760, %v4329_v35  ;;  %v3669_v25 = vpack.c.bf16 %v696_v48, %v684_v2 }
  0xa2   : > { %3666 = vmatprep.subr.bf16.mxu0 %v4337_v45  ;;  %v743_v29 = vsub.f32 %v4307_v10, %v4886_v49  ;;  %v1321_v30 = vand.u32 4294901760, %v1320_v3  ;;  %v1328_v27 = vand.u32 4294901760, %v1327_v4  ;;  %v673_v34 = vand.u32 4294901760, %v672_v46 }
  0xa3   : > { %v3671_v32 = vpack.c.bf16 %v702_v60, %v690_v59  ;;  %v732_v26 = vand.u32 4294901760, %v731_v5  ;;  %v737_v48 = vsub.f32 %v4327_v39, %v736_v21  ;;  %v749_v2 = vsub.f32 %v4329_v35, %v748_v24 }
  0xa4   : > { %v744_v59 = vand.u32 4294901760, %v743_v29  ;;  %v3741_v3 = vpack.c.bf16 %v1328_v27, %v1321_v30  ;;  %v3691_v15 = vpack.c.bf16 %v4329_v35, %v4327_v39  ;;  %v4892_v18 = vand.u32 4294901760, %v4303_v7 }
  0xa5   : > { %3668 = vmatpush1.bf16.msra.mxu0 %v4350_v50  ;;  %v570_v41 = vld [vmem:[#allocation2 + $0x70] sm:$0xff]  ;;  %v573_v42 = vld [vmem:[#allocation2 + $0x88] sm:$0xff]  ;;  %v750_v5 = vand.u32 4294901760, %v749_v2 }
  0xa6   : > { %3670 = vmatprep.subr.bf16.mxu0 %v3669_v25  ;;  %v1238_v9 = vand.u32 4294901760, %v570_v41  ;;  %v1241_v20 = vand.u32 4294901760, %v573_v42  ;;  %v3677_v29 = vpack.c.bf16 %v744_v59, %v732_v26  ;;  %v3681_v26 = vpack.c.bf16 %v4271_v38, %v4274_v40 }
  0xa7   : > { %v4896_v38 = vand.u32 4294901760, %v4286_v61  ;;  %v4897_v40 = vand.u32 4294901760, %v4307_v10 }
  0xa8   : > { %v4367_v49 = vpack.c.bf16 %v1241_v20, %v1238_v9  ;;  %663 = vmatmul.mubr.f32.vlgmr.msra.gmra.mrb[0].mxu0 %v4195_v31  ;;  %v4370_v60 = vsub.f32 %v570_v41, %v1238_v9  ;;  %v4372_v25 = vsub.f32 %v573_v42, %v1241_v20  ;;  %v738_v31 = vand.u32 4294901760, %v737_v48 }
  0xa9   : > { %3672 = vmatpush1.bf16.msra.mxu0 %v3671_v32  ;;  %668 = vmatprep.mubr.f32.mxu0 %v4063_v36  ;;  %v3683_v42 = vpack.c.bf16 %v4305_v8, %v4303_v7  ;;  %v3689_v9 = vpack.c.bf16 %v4307_v10, %v4286_v61 }
  0xaa   : > { %3738 = vmatprep.subr.bf16.mxu1 %v4367_v49  ;;  %3674 = vmatprep.subr.bf16.mxu0 %v4205_v43  ;;  %v1347_v4 = vand.u32 4294901760, %v4370_v60  ;;  %v1354_v46 = vand.u32 4294901760, %v4372_v25  ;;  %v3679_v41 = vpack.c.bf16 %v750_v5, %v738_v31  ;;  %v3761_v16 = vpack.c.bf16 %v4372_v25, %v4370_v60 }
  0xab   : > { %3740 = vmatpush3.bf16.msra.mxu1 %v4367_v49 }
  0xac   : > { %3742 = vmatprep.subr.bf16.mxu1 %v3741_v3  ;;  %674 = vmatmul.mubr.f32.gmra.mrb[2].mxu0 %v673_v34  ;;  %v1348_v32 = vsub.f32 %v4370_v60, %v1347_v4  ;;  %v1355_v27 = vsub.f32 %v4372_v25, %v1354_v46 }
  0xad   : > { %3676 = vmatpush1.bf16.msra.mxu0 %v4211_v44  ;;  %804 = vmatprep.mubr.f32.mxu0 %v4063_v36 }
  0xae   : > { %3490 = vmatmul.mubr.f32.vlgmr.msra.gmra.mrb[0].mxu1 %v673_v34  ;;  %3678 = vmatprep.subr.bf16.mxu0 %v3677_v29  ;;  %v1349_v43 = vand.u32 4294901760, %v1348_v32  ;;  %v1356_v30 = vand.u32 4294901760, %v1355_v27  ;;  %v3753_v34 = vpack.c.bf16 %v4291_v1, %v4289_v63 }
  0xaf   : > { %3744 = vmatpush3.bf16.msra.mxu1 %v3741_v3  ;;  %3504 = vmatprep.mubr.f32.mxu1 %v4158_v14 }
  0xb0   : > { %3746 = vmatprep.subr.bf16.mxu1 %v4213_v51  ;;  %v3749_v44 = vpack.c.bf16 %v1356_v30, %v1349_v43 }
  0xb1   : > { %3680 = vmatpush1.bf16.msra.mxu0 %v3679_v41 }
  0xb2   : > { %3682 = vmatprep.subr.bf16.mxu0 %v3681_v26 }
  0xb3   : > { %3748 = vmatpush3.bf16.msra.mxu1 %v4213_v51 }
  0xb4   : > { %3750 = vmatprep.subr.bf16.mxu1 %v3749_v44  ;;  %806 = vmatmul.mubr.f32.vlgmr.msra.gmra.mrb[0].mxu0 %v4158_v14 }
  0xb5   : > { %3684 = vmatpush1.bf16.msra.mxu0 %v3683_v42  ;;  %811 = vmatprep.mubr.f32.mxu0 %v4063_v36 }
  0xb6   : > { %3686 = vmatprep.subr.bf16.mxu0 %v3685_v52  ;;  %v4894_v52 = vand.u32 4294901760, %v4289_v63 }
  0xb7   : > { %3752 = vmatpush3.bf16.msra.mxu1 %v3749_v44 }
  0xb8   : > { %3754 = vmatprep.subr.bf16.mxu1 %v3753_v34  ;;  %813 = vmatmul.mubr.f32.gmra.mrb[2].mxu0 %v4269_v37 }
  0xb9   : > { %3688 = vmatpush1.bf16.msra.mxu0 %v3687_v53  ;;  %907 = vmatprep.mubr.f32.mxu0 %v4063_v36  ;;  %v4895_v53 = vand.u32 4294901760, %v4291_v1 }
  0xba   : > { %3505 = vmatmul.mubr.f32.vlgmr.msra.gmra.mrb[0].mxu1 %v4269_v37  ;;  %3690 = vmatprep.subr.bf16.mxu0 %v3689_v9 }
  0xbb   : > { %3756 = vmatpush3.bf16.msra.mxu1 %v3753_v34  ;;  %3519 = vmatprep.mubr.f32.mxu1 %v4169_v19 }
  0xbc   : > { %3758 = vmatprep.subr.bf16.mxu1 %v4219_v54 }
  0xbd   : > { %3692 = vmatpush1.bf16.msra.mxu0 %v3691_v15 }
  0xbe   : > { %3694 = vmatprep.subr.bf16.mxu0 %v4246_v12 }
  0xbf   : > { %3760 = vmatpush3.bf16.msra.mxu1 %v4219_v54  ;;  %v3777_v54 = vpack.c.bf16 %v4895_v53, %v4894_v52 }
  0xc0   : > { %3762 = vmatprep.subr.bf16.mxu1 %v3761_v16  ;;  %910 = vmatmul.mubr.f32.vlgmr.msra.gmra.mrb[0].mxu0 %v4169_v19  ;;  %v4893_v19 = vand.u32 4294901760, %v4305_v8 }
  0xc1   : > { %3696 = vmatpush1.bf16.msra.mxu0 %v4301_v6  ;;  %915 = vmatprep.mubr.f32.mxu0 %v4063_v36 }
  0xc2   : > { %3698 = vmatprep.subr.bf16.mxu0 %v4151_v11  ;;  %v3707_v51 = vpack.c.bf16 %v4893_v19, %v4892_v18 }
  0xc3   : > { %3764 = vmatpush3.bf16.msra.mxu1 %v3761_v16 }
  0xc4   : > { %3766 = vmatprep.subr.bf16.mxu1 %v4265_v33  ;;  %918 = vmatmul.mubr.f32.gmra.mrb[2].mxu0 %v4282_v47 }
  0xc5   : > { %3700 = vmatpush1.bf16.msra.mxu0 %v4156_v13  ;;  %1000 = vmatprep.mubr.f32.mxu0 %v4063_v36 }
  0xc6   : > { %3520 = vmatmul.mubr.f32.vlgmr.msra.gmra.mrb[0].mxu1 %v4282_v47  ;;  %3702 = vmatprep.subr.bf16.mxu0 %v4337_v45  ;;  %v3713_v47 = vpack.c.bf16 %v4897_v40, %v4896_v38 }
  0xc7   : > { %3768 = vmatpush3.bf16.msra.mxu1 %v4265_v33  ;;  %3534 = vmatprep.mubr.f32.mxu1 %v4177_v22 }
  0xc8   : > { %3770 = vmatprep.subr.bf16.mxu1 %v4179_v23 }
  0xc9   : > { %3704 = vmatpush1.bf16.msra.mxu0 %v4350_v50 }
  0xca   : > { %3706 = vmatprep.subr.bf16.mxu0 %v3705_v17 }
  0xcb   : > { %3772 = vmatpush3.bf16.msra.mxu1 %v4179_v23 }
  0xcc   : > { %3774 = vmatprep.subr.bf16.mxu1 %v4367_v49  ;;  %1004 = vmatmul.mubr.f32.vlgmr.msra.gmra.mrb[0].mxu0 %v4177_v22  ;;  %v3715_v22 = vpack.c.bf16 %v748_v24, %v736_v21 }
  0xcd   : > { %3708 = vmatpush1.bf16.msra.mxu0 %v3707_v51  ;;  %1009 = vmatprep.mubr.f32.mxu0 %v4063_v36 }
  0xce   : > { %3710 = vmatprep.subr.bf16.mxu0 %v4221_v55  ;;  %v3785_v55 = vpack.c.bf16 %v1354_v46, %v1347_v4 }
  0xcf   : > { %3776 = vmatpush3.bf16.msra.mxu1 %v4367_v49 }
  0xd0   : > { %3778 = vmatprep.subr.bf16.mxu1 %v3777_v54  ;;  %1013 = vmatmul.mubr.f32.gmra.mrb[2].mxu0 %v4316_v28 }
  0xd1   : > { %3712 = vmatpush1.bf16.msra.mxu0 %v4223_v56  ;;  %1119 = vmatprep.mubr.f32.mxu0 %v4063_v36 }
  0xd2   : > { %3535 = vmatmul.mubr.f32.vlgmr.msra.gmra.mrb[0].mxu1 %v4316_v28  ;;  %3714 = vmatprep.subr.bf16.mxu0 %v3713_v47 }
  0xd3   : > { %3780 = vmatpush3.bf16.msra.mxu1 %v3777_v54  ;;  %3549 = vmatprep.mubr.f32.mxu1 %v4158_v14 }
  0xd4   : > { %3782 = vmatprep.subr.bf16.mxu1 %v4225_v57 }
  0xd5   : > { %3716 = vmatpush1.bf16.msra.mxu0 %v3715_v22 }
  0xd6   : > { %3718 = vmatprep.subr.bf16.mxu0 %v4246_v12 }
  0xd7   : > { %3784 = vmatpush3.bf16.msra.mxu1 %v4225_v57 }
  0xd8   : > { %3786 = vmatprep.subr.bf16.mxu1 %v3785_v55  ;;  %1121 = vmatmul.mubr.f32.vlgmr.msra.gmra.mrb[0].mxu0 %v4158_v14 }
  0xd9   : > { %3720 = vmatpush1.bf16.msra.mxu0 %v4301_v6  ;;  %1126 = vmatprep.mubr.f32.mxu0 %v4063_v36 }
  0xda   : > { %3722 = vmatprep.subr.bf16.mxu0 %v4151_v11  ;;  %v1789_v11 = vpop.permute.xlu1 %1788 }
  0xdb   : > { %3788 = vmatpush3.bf16.msra.mxu1 %v3785_v55 }
  0xdc   : > { %3790 = vmatprep.subr.bf16.mxu1 %v4265_v33  ;;  %1128 = vmatmul.mubr.f32.gmra.mrb[2].mxu0 %v4269_v37 }
  0xdd   : > { %3724 = vmatpush1.bf16.msra.mxu0 %v4156_v13  ;;  %1210 = vmatprep.mubr.f32.mxu0 %v4063_v36  ;;  %v1784_v13 = vpop.permute.xlu0 %1783 }
  0xde   : > { %3550 = vmatmul.mubr.f32.vlgmr.msra.gmra.mrb[0].mxu1 %v4269_v37  ;;  %3726 = vmatprep.subr.bf16.mxu0 %v4337_v45  ;;  %v1802_v57 = vpop.permute.xlu1 %1801 }
  0xdf   : > { %3792 = vmatpush3.bf16.msra.mxu1 %v4265_v33  ;;  %3564 = vmatprep.mubr.f32.mxu1 %v4158_v14 }
  0xe0   : > { %3794 = vmatprep.subr.bf16.mxu1 %v4179_v23 }
  0xe1   : > { %3728 = vmatpush1.bf16.msra.mxu0 %v4350_v50 }
  0xe3   : > { %3796 = vmatpush3.bf16.msra.mxu1 %v4179_v23 }
  0xe4   : > { %3798 = vmatprep.subr.bf16.mxu1 %v4367_v49  ;;  %1212 = vmatmul.mubr.f32.vlgmr.msra.gmra.mrb[0].mxu0 %v4158_v14  ;;  %v1807_v14 = vpop.permute.xlu0 %1806 }
  0xe5   : > { %1217 = vmatprep.mubr.f32.mxu0 %v4063_v36 }
  0xe7   : > { %3800 = vmatpush3.bf16.msra.mxu1 %v4367_v49 }
  0xe8   : > { %1219 = vmatmul.mubr.f32.gmra.mrb[2].mxu0 %v4269_v37 }
  0xe9   : > { %2003 = vmatprep.mubr.f32.mxu0 %v4063_v36 }
  0xea   : > { %3565 = vmatmul.mubr.f32.vlgmr.msra.gmra.mrb[0].mxu1 %v4269_v37 }
 0x1b7   : > { %v1213_v56 = vpop.f32.mrb[0].mxu0 }
 0x1b8   : > { %v1791_v12 = vmul.f32 %v1784_v13, %v1213_v56  ;;  %v1215_v23 = vpop.f32.mrb[1].mxu0 }
 0x1b9   : > { %v1792_v33 = vmul.f32 %v1784_v13, %v1215_v23 }
 0x1ba   : > { %v1809_v58 = vadd.f32 %v1802_v57, %v1791_v12 }
 0x1bb   : > { %v1810_v61 = vadd.f32 %v1802_v57, %v1792_v33  ;;  %v1220_v62 = vpop.f32.mrb[2].mxu0 }
 0x1bc   : > { %v1794_v63 = vmul.f32 %v1789_v11, %v1220_v62  ;;  %v1222_v1 = vpop.f32.mrb[3].mxu0  ;;  %vm1815_vm5 = vcmp.ge.f32.partialorder %v1809_v58, 0.0  ;;  %v1821_v6 = vmul.f32 0.01, %v1809_v58 }
 0x1bd   : > { %v3566_v7 = vpop.f32.mrb[0].mxu1  ;;  %v1795_v8 = vmul.f32 %v1789_v11, %v1222_v1  ;;  %vm1816_vm6 = vcmp.ge.f32.partialorder %v1810_v61, 0.0  ;;  %v1822_v10 = vmul.f32 0.01, %v1810_v61 }
 0x1be   : > { %v1812_v37 = vadd.f32 %v1807_v14, %v1794_v63  ;;  %v1796_v28 = vmul.f32 %v3566_v7, %v1789_v11  ;;  %v1769_v39 = vpop.f32.mrb[1].mxu1  ;;  %v4492_v35 = vsel %vm1815_vm5, %v1809_v58, %v1821_v6  ;;  %v1835_v63 = vld [vmem:[%s4877_s6] sm:$0xff] }
 0x1bf   : > { %v1813_v45 = vadd.f32 %v1807_v14, %v1795_v8  ;;  %v1793_v49 = vmul.f32 %v1784_v13, %v1769_v39  ;;  %1837 = vrot.lane.b32.xlu1 %v4492_v35, %s4061_s17  ;;  %v1828_v50 = vsel %vm1816_vm6, %v1810_v61, %v1822_v10  ;;  %v1937_v21 = vand.u32 4294901760, %v4492_v35 }
 0x1c0   : > { %v1814_v24 = vadd.f32 %v1807_v14, %v1796_v28  ;;  %vm1818_vm7 = vcmp.ge.f32.partialorder %v1812_v37, 0.0  ;;  %v1824_v20 = vmul.f32 0.01, %v1812_v37  ;;  %v1935_v48 = vand.u32 4294901760, %v1828_v50  ;;  %v1833_v28 = vld [vmem:[%s444_s27] sm:$0xff] }
 0x1c1   : > { %v1811_v2 = vadd.f32 %v1802_v57, %v1793_v49  ;;  %vm1819_vm8 = vcmp.ge.f32.partialorder %v1813_v45, 0.0  ;;  %v1825_v59 = vmul.f32 0.01, %v1813_v45  ;;  %v4498_v60 = vsub.f32 %v4492_v35, %v1937_v21 }
 0x1c2   : > { %vm1820_vm9 = vcmp.ge.f32.partialorder %v1814_v24, 0.0  ;;  %v1826_v25 = vmul.f32 0.01, %v1814_v24  ;;  %v4500_v3 = vsel %vm1818_vm7, %v1812_v37, %v1824_v20  ;;  %v4502_v4 = vsub.f32 %v1828_v50, %v1935_v48 }
 0x1c3   : > { %1841 = vrot.lane.b32.xlu1 %v1828_v50, %s4061_s17  ;;  %vm1817_vm10 = vcmp.ge.f32.partialorder %v1811_v2, 0.0  ;;  %v1823_v46 = vmul.f32 0.01, %v1811_v2  ;;  %v1831_v31 = vsel %vm1819_vm8, %v1813_v45, %v1825_v59  ;;  %v1941_v5 = vand.u32 4294901760, %v4500_v3 }
 0x1c4   : > { %v1832_v29 = vsel %vm1820_vm9, %v1814_v24, %v1826_v25  ;;  %v1939_v32 = vand.u32 4294901760, %v1831_v31  ;;  %v2052_v27 = vand.u32 4294901760, %v4502_v4  ;;  %v2058_v43 = vand.u32 4294901760, %v4498_v60 }
 0x1c5   : > { %1847 = vrot.lane.b32.xlu0 %v1832_v29, %s4061_s17  ;;  %v1829_v30 = vsel %vm1817_vm10, %v1811_v2, %v1823_v46  ;;  %v2581_v41 = vand.u32 4294901760, %v1832_v29  ;;  %v4509_v26 = vpack.c.bf16 %v1941_v5, %v1937_v21  ;;  %v4512_v42 = vsub.f32 %v4500_v3, %v1941_v5 }
 0x1c6   : > { %v2578_v44 = vand.u32 4294901760, %v1829_v30  ;;  %v4514_v34 = vpack.c.bf16 %v1939_v32, %v1935_v48  ;;  %v4516_v9 = vsub.f32 %v1831_v31, %v1939_v32  ;;  %v2059_v15 = vsub.f32 %v4498_v60, %v2058_v43 }
 0x1c7   : > { %1845 = vrot.lane.b32.xlu1 %v1829_v30, %s4061_s17  ;;  %v2070_v16 = vand.u32 4294901760, %v4512_v42  ;;  %v2685_v17 = vsub.f32 %v1832_v29, %v2581_v41  ;;  %v3831_v18 = vpack.c.bf16 %v4512_v42, %v4498_v60  ;;  %v2053_v51 = vsub.f32 %v4502_v4, %v2052_v27 }
 0x1c8   : > { %v4523_v19 = vpack.c.bf16 %v2581_v41, %v2578_v44  ;;  %v2064_v52 = vand.u32 4294901760, %v4516_v9  ;;  %v2678_v53 = vsub.f32 %v1829_v30, %v2578_v44  ;;  %v3829_v40 = vpack.c.bf16 %v4516_v9, %v4502_v4 }
 0x1c9   : > { %1839 = vrot.lane.b32.xlu0 %v4500_v3, %s4061_s17  ;;  %v2071_v54 = vsub.f32 %v4512_v42, %v2070_v16  ;;  %v2686_v38 = vand.u32 4294901760, %v2685_v17  ;;  %v2060_v13 = vand.u32 4294901760, %v2059_v15  ;;  %v4538_v12 = vpack.c.bf16 %v2070_v16, %v2058_v43 }
 0x1ca   : > { %v2065_v47 = vsub.f32 %v4516_v9, %v2064_v52  ;;  %v2679_v22 = vand.u32 4294901760, %v2678_v53  ;;  %v4533_v55 = vpack.c.bf16 %v2685_v17, %v2678_v53  ;;  %v4535_v11 = vpack.c.bf16 %v2064_v52, %v2052_v27 }
 0x1cb   : > { %1871 = vrot.lane.b32.xlu1 %v1828_v50, %s4062_s20  ;;  %v2072_v56 = vand.u32 4294901760, %v2071_v54  ;;  %v2687_v57 = vsub.f32 %v2685_v17, %v2686_v38  ;;  %v2054_v23 = vand.u32 4294901760, %v2053_v51  ;;  %v1922_v7 = vsel %vm574_vm0, %v1835_v63, 0  ;;  %v1834_v50 = vld [vmem:[%s444_s27 + $0x8] sm:$0xff] }
 0x1cc   : > { %v2066_v33 = vand.u32 4294901760, %v2065_v47  ;;  %v2680_v58 = vsub.f32 %v2678_v53, %v2679_v22  ;;  %v4540_v61 = vpack.c.bf16 %v2686_v38, %v2679_v22  ;;  %v4552_v8 = vand.u32 4294901760, %v1922_v7 }
 0x1cd   : > { %1843 = vrot.lane.b32.xlu0 %v1831_v31, %s4061_s17  ;;  %v4543_v14 = vpack.c.bf16 %v2072_v56, %v2060_v13  ;;  %v2688_v62 = vand.u32 4294901760, %v2687_v57 }
 0x1ce   : > { %v4548_v1 = vpack.c.bf16 %v2066_v33, %v2054_v23  ;;  %v2681_v6 = vand.u32 4294901760, %v2680_v58  ;;  %v4562_v37 = vsub.f32 %v1922_v7, %v4552_v8 }
 0x1cf   : > { %1875 = vrot.lane.b32.xlu1 %v1829_v30, %s4062_s20 }
 0x1d0   : > { %v4554_v10 = vpack.c.bf16 %v2688_v62, %v2681_v6  ;;  %v4567_v39 = vand.u32 4294901760, %v4562_v37 }
 0x1d1   : > { %1877 = vrot.lane.b32.xlu0 %v1832_v29, %s4062_s20 }
 0x1d2   : > { %v2007_v45 = vsub.f32 %v4562_v37, %v4567_v39 }
 0x1d3   : > { %1867 = vrot.lane.b32.xlu1 %v4492_v35, %s4062_s20 }
 0x1d4   : > { %v4573_v49 = vand.u32 4294901760, %v2007_v45 }
 0x1d5   : > { %1873 = vrot.lane.b32.xlu0 %v1831_v31, %s4062_s20 }
 0x1d6   : > { %3579 = vmatprep.mubr.f32.mxu1 %v4573_v49 }
 0x1d7   : > { %1895 = vrot.lane.b32.xlu1 %v1833_v28, %s4064_s25 }
 0x1d9   : > { %1869 = vrot.lane.b32.xlu0 %v4500_v3, %s4062_s20  ;;  %v1836_v3 = vld [vmem:[%s4877_s6 + $0x8] sm:$0xff] }
 0x1da   : > { %v1925_v5 = vsel %vm574_vm0, %v1836_v3, 0 }
 0x1db   : > { %v4600_v16 = vand.u32 4294901760, %v1925_v5 }
 0x1dd   : > { %1897 = vrot.lane.b32.xlu0 %v1834_v50, %s4064_s25  ;;  %v4616_v23 = vsub.f32 %v1925_v5, %v4600_v16 }
 0x231   : > { %v1838_v35 = vpop.permute.xlu1 %1837 }
 0x235   : > { %v1842_v21 = vpop.permute.xlu1 %1841 }
 0x236   : > { %v1851_v24 = vsel %vm498_vm1, %v1838_v35, %v1842_v21 }
 0x237   : > { %v1848_v20 = vpop.permute.xlu0 %1847  ;;  %v1927_v32 = vand.u32 4294901760, %v1851_v24 }
 0x239   : > { %v1846_v48 = vpop.permute.xlu1 %1845  ;;  %v4606_v53 = vsub.f32 %v1851_v24, %v1927_v32 }
 0x23a   : > { %v4583_v2 = vsel %vm498_vm1, %v1842_v21, %v1846_v48  ;;  %v1853_v59 = vsel %vm498_vm1, %v1846_v48, %v1838_v35 }
 0x23b   : > { %1855 = vst [vmem:[#allocation3] sm:$0xff] %v1853_v59  ;;  %v1840_v25 = vpop.permute.xlu0 %1839  ;;  %v2572_v44 = vand.u32 4294901760, %v4583_v2 }
 0x23c   : > { %1891 = vst.msk [vmem:[#allocation3] sm:$0xff] %vm469_vm2, %v1833_v28  ;;  %v1854_v46 = vsel %vm498_vm1, %v1848_v20, %v1840_v25  ;;  %v2028_v28 = vand.u32 4294901760, %v4606_v53 }
 0x23d   : > { %1858 = vst [vmem:[#allocation3 + $0x18] sm:$0xff] %v1854_v46  ;;  %v1872_v31 = vpop.permute.xlu1 %1871  ;;  %v4645_v46 = vand.u32 4294901760, %v4616_v23 }
 0x23e   : > { %1892 = vst.msk [vmem:[#allocation3 + $0x18] sm:$0xff] %vm469_vm2, %v1834_v50 }
 0x23f   : > { %v1844_v29 = vpop.permute.xlu0 %1843 }
 0x240   : > { %v1850_v27 = vsel %vm498_vm1, %v1844_v29, %v1848_v20  ;;  %v1852_v43 = vsel %vm498_vm1, %v1840_v25, %v1844_v29 }
 0x241   : > { %v1876_v30 = vpop.permute.xlu1 %1875  ;;  %v1931_v41 = vand.u32 4294901760, %v1852_v43  ;;  %v2575_v15 = vand.u32 4294901760, %v1850_v27 }
 0x242   : > { %v1879_v17 = vsel %vm529_vm3, %v1872_v31, %v1876_v30 }
 0x243   : > { %v1878_v51 = vpop.permute.xlu0 %1877  ;;  %v4604_v52 = vpack.c.bf16 %v1931_v41, %v1927_v32  ;;  %v4608_v54 = vsub.f32 %v1852_v43, %v1931_v41  ;;  %v4610_v38 = vpack.c.bf16 %v2575_v15, %v2572_v44  ;;  %v1903_v47 = vld [vmem:[#allocation3] sm:$0xff]  ;;  %v1943_v7 = vand.u32 4294901760, %v1879_v17 }
 0x244   : > { %v1929_v22 = vand.u32 4294901760, %v1903_v47  ;;  %v2029_v32 = vsub.f32 %v4606_v53, %v2028_v28  ;;  %v4656_v43 = vsub.f32 %v4583_v2, %v2572_v44 }
 0x245   : > { %v1868_v13 = vpop.permute.xlu1 %1867  ;;  %3802 = vmatprep.subr.bf16.mxu0 %v4604_v52  ;;  %3874 = vmatprep.subr.bf16.mxu1 %v4610_v38  ;;  %v1906_v56 = vld [vmem:[#allocation3 + $0x18] sm:$0xff]  ;;  %v2040_v57 = vand.u32 4294901760, %v4608_v54  ;;  %v4648_v5 = vsub.f32 %v1879_v17, %v1943_v7 }
 0x246   : > { %v1881_v33 = vsel %vm529_vm3, %v1868_v13, %v1872_v31  ;;  %v1883_v58 = vsel %vm529_vm3, %v1876_v30, %v1868_v13  ;;  %v1933_v62 = vand.u32 4294901760, %v1906_v56  ;;  %v4622_v63 = vsub.f32 %v1903_v47, %v1929_v22  ;;  %3876 = vmatpush3.bf16.msra.mxu1 %v4610_v38 }
 0x247   : > { %1887 = vst [vmem:[#allocation3 + $0x70] sm:$0xff] %v1883_v58  ;;  %v1874_v6 = vpop.permute.xlu0 %1873  ;;  %3878 = vmatprep.subr.bf16.mxu1 %v4523_v19  ;;  %v2041_v48 = vsub.f32 %v4608_v54, %v2040_v57  ;;  %v1945_v59 = vand.u32 4294901760, %v1881_v33  ;;  %v4665_v47 = vsub.f32 %v1850_v27, %v2575_v15  ;;  %v2030_v15 = vand.u32 4294901760, %v2029_v32 }
 0x248   : > { %v1880_v45 = vsel %vm529_vm3, %v1874_v6, %v1878_v51  ;;  %v4629_v50 = vpack.c.bf16 %v1933_v62, %v1929_v22  ;;  %v4631_v35 = vsub.f32 %v1906_v56, %v1933_v62  ;;  %v2034_v21 = vand.u32 4294901760, %v4622_v63 }
 0x249   : > { %v1896_v24 = vpop.permute.xlu1 %1895  ;;  %v1947_v20 = vand.u32 4294901760, %v1880_v45  ;;  %v2042_v56 = vand.u32 4294901760, %v2041_v48  ;;  %v4671_v44 = vsub.f32 %v1881_v33, %v1945_v59  ;;  %v2018_v33 = vsub.f32 %v4616_v23, %v4645_v46 }
 0x24a   : > { %1901 = vst.msk [vmem:[#allocation3 + $0x70] sm:$0xff] %vm553_vm4, %v1896_v24  ;;  %3804 = vmatpush1.bf16.msra.mxu0 %v4629_v50  ;;  %3880 = vmatpush3.bf16.msra.mxu1 %v4523_v19  ;;  %v2035_v25 = vsub.f32 %v4622_v63, %v2034_v21  ;;  %v2046_v3 = vand.u32 4294901760, %v4631_v35  ;;  %v3897_v4 = vpack.c.bf16 %v4665_v47, %v4656_v43 }
 0x24b   : > { %v1870_v31 = vpop.permute.xlu0 %1869  ;;  %3806 = vmatprep.subr.bf16.mxu0 %v4514_v34  ;;  %v4650_v29 = vsub.f32 %v1880_v45, %v1947_v20  ;;  %v4667_v22 = vpack.c.bf16 %v1947_v20, %v1943_v7  ;;  %v4888_v7 = vand.u32 4294901760, %v4665_v47  ;;  %v3813_v45 = vpack.c.bf16 %v2042_v56, %v2030_v15 }
 0x24c   : > { %v1882_v30 = vsel %vm529_vm3, %v1870_v31, %v1874_v6  ;;  %v1884_v41 = vsel %vm529_vm3, %v1878_v51, %v1870_v31  ;;  %v2047_v17 = vsub.f32 %v4631_v35, %v2046_v3  ;;  %v2036_v58 = vand.u32 4294901760, %v2035_v25 }
 0x24d   : > { %1890 = vst [vmem:[#allocation3 + $0x88] sm:$0xff] %v1884_v41  ;;  %v1949_v13 = vand.u32 4294901760, %v1882_v30  ;;  %v4889_v2 = vand.u32 4294901760, %v4650_v29  ;;  %v2076_v6 = vand.u32 4294901760, %v4648_v5  ;;  %v4890_v20 = vand.u32 4294901760, %v4656_v43 }
 0x24e   : > { %3808 = vmatpush1.bf16.msra.mxu0 %v4509_v26  ;;  %v2048_v0 = vand.u32 4294901760, %v2047_v17  ;;  %v4891_v32 = vand.u32 4294901760, %v4671_v44  ;;  %v2673_v41 = vsub.f32 %v4665_v47, %v4888_v7  ;;  %v2019_v56 = vand.u32 4294901760, %v2018_v33 }
 0x24f   : > { %v1898_v51 = vpop.permute.xlu0 %1897  ;;  %3810 = vmatprep.subr.bf16.mxu0 %v4667_v22  ;;  %v4674_v62 = vpack.c.bf16 %v1949_v13, %v1945_v59  ;;  %v4676_v27 = vsub.f32 %v1882_v30, %v1949_v13  ;;  %v2089_v48 = vsub.f32 %v4650_v29, %v4889_v2  ;;  %v2077_v30 = vsub.f32 %v4648_v5, %v2076_v6 }
 0x250   : > { %1902 = vst.msk [vmem:[#allocation3 + $0x88] sm:$0xff] %vm553_vm4, %v1898_v51  ;;  %v3815_v31 = vpack.c.bf16 %v2048_v0, %v2036_v58  ;;  %v2666_v13 = vsub.f32 %v4656_v43, %v4890_v20  ;;  %v2083_v0 = vsub.f32 %v4671_v44, %v4891_v32  ;;  %v3849_v42 = vpack.c.bf16 %v2040_v57, %v2028_v28 }
 0x251   : > { %v1917_v24 = vld [vmem:[#allocation3 + $0x70] sm:$0xff]  ;;  %v4887_v59 = vand.u32 4294901760, %v4676_v27  ;;  %v2090_v58 = vand.u32 4294901760, %v2089_v48  ;;  %v3835_v9 = vpack.c.bf16 %v4676_v27, %v4671_v44 }
 0x252   : > { %3812 = vmatpush1.bf16.msra.mxu0 %v4674_v62  ;;  %v2584_v25 = vand.u32 4294901760, %v1917_v24  ;;  %v2667_v2 = vand.u32 4294901760, %v2666_v13  ;;  %v2084_v48 = vand.u32 4294901760, %v2083_v0  ;;  %v3146_v13 = vld [vmem:[%s464_s19 + $0x8] sm:$0xff] }
 0x253   : > { %3814 = vmatprep.subr.bf16.mxu0 %v3813_v45  ;;  %v2095_v17 = vsub.f32 %v4676_v27, %v4887_v59  ;;  %v2078_v45 = vand.u32 4294901760, %v2077_v30  ;;  %v2674_v59 = vand.u32 4294901760, %v2673_v41 }
 0x254   : > { %v4707_v51 = vsub.f32 %v1917_v24, %v2584_v25 }
 0x255   : > { %2009 = vmatmul.mubr.f32.vlgmr.msra.gmra.mrb[4].mxu0 %v4573_v49  ;;  %v2096_v7 = vand.u32 4294901760, %v2095_v17  ;;  %v3821_v20 = vpack.c.bf16 %v2090_v58, %v2078_v45  ;;  %v3833_v17 = vpack.c.bf16 %v4650_v29, %v4648_v5 }
 0x256   : > { %3816 = vmatpush1.bf16.msra.mxu0 %v3815_v31  ;;  %2014 = vmatprep.mubr.f32.mxu0 %v4063_v36  ;;  %v2693_v31 = vand.u32 4294901760, %v4707_v51 }
 0x257   : > { %v1920_v15 = vld [vmem:[#allocation3 + $0x88] sm:$0xff]  ;;  %3818 = vmatprep.subr.bf16.mxu0 %v4548_v1  ;;  %v3885_v1 = vpack.c.bf16 %v2674_v59, %v2667_v2  ;;  %v3823_v24 = vpack.c.bf16 %v2096_v7, %v2084_v48  ;;  %v3827_v2 = vpack.c.bf16 %v4631_v35, %v4622_v63 }
 0x258   : > { %v2587_v49 = vand.u32 4294901760, %v1920_v15 }
 0x259   : > { %2020 = vmatmul.mubr.f32.gmra.mrb[6].mxu0 %v2019_v56 }
 0x25a   : > { %v4710_v33 = vpack.c.bf16 %v2587_v49, %v2584_v25  ;;  %3820 = vmatpush1.bf16.msra.mxu0 %v4543_v14  ;;  %v4714_v32 = vsub.f32 %v1920_v15, %v2587_v49  ;;  %2150 = vmatprep.mubr.f32.mxu0 %v4063_v36  ;;  %v3825_v25 = vpack.c.bf16 %v4608_v54, %v4606_v53  ;;  %v4902_v53 = vand.u32 4294901760, %v4676_v27 }
 0x25b   : > { %3822 = vmatprep.subr.bf16.mxu0 %v3821_v20  ;;  %v2694_v14 = vsub.f32 %v4707_v51, %v2693_v31 }
 0x25c   : > { %3882 = vmatprep.subr.bf16.mxu1 %v4710_v33  ;;  %v2700_v30 = vand.u32 4294901760, %v4714_v32  ;;  %v3905_v60 = vpack.c.bf16 %v4714_v32, %v4707_v51 }
 0x25d   : > { %3884 = vmatpush3.bf16.msra.mxu1 %v4710_v33  ;;  %v2695_v59 = vand.u32 4294901760, %v2694_v14 }
 0x25e   : > { %3886 = vmatprep.subr.bf16.mxu1 %v3885_v1  ;;  %3824 = vmatpush1.bf16.msra.mxu0 %v3823_v24  ;;  %v2701_v20 = vsub.f32 %v4714_v32, %v2700_v30  ;;  %v3145_v32 = vld [vmem:[%s464_s19] sm:$0xff] }
 0x25f   : > { %3826 = vmatprep.subr.bf16.mxu0 %v3825_v25 }
 0x260   : > { %3580 = vmatmul.mubr.f32.vlgmr.msra.gmra.mrb[2].mxu1 %v2019_v56  ;;  %v2702_v7 = vand.u32 4294901760, %v2701_v20 }
 0x261   : > { %3888 = vmatpush3.bf16.msra.mxu1 %v3885_v1  ;;  %2152 = vmatmul.mubr.f32.vlgmr.msra.gmra.mrb[4].mxu0 %v4552_v8 }
 0x262   : > { %3890 = vmatprep.subr.bf16.mxu1 %v4554_v10  ;;  %3828 = vmatpush1.bf16.msra.mxu0 %v3827_v2  ;;  %v3893_v41 = vpack.c.bf16 %v2702_v7, %v2695_v59 }
 0x263   : > { %3830 = vmatprep.subr.bf16.mxu0 %v3829_v40  ;;  %3594 = vmatprep.mubr.f32.mxu1 %v4552_v8  ;;  %v4898_v40 = vand.u32 4294901760, %v4650_v29 }
 0x264   : > { %2157 = vmatprep.mubr.f32.mxu0 %v4063_v36 }
 0x265   : > { %3892 = vmatpush3.bf16.msra.mxu1 %v4554_v10  ;;  %2159 = vmatmul.mubr.f32.gmra.mrb[6].mxu0 %v4600_v16  ;;  %v4900_v10 = vand.u32 4294901760, %v4665_v47  ;;  %v3132_v47 = vld [vmem:[%s4833_s14 + $0x8] sm:$0xff] }
 0x266   : > { %3894 = vmatprep.subr.bf16.mxu1 %v3893_v41  ;;  %3832 = vmatpush1.bf16.msra.mxu0 %v3831_v18  ;;  %v3851_v18 = vpack.c.bf16 %v2046_v3, %v2034_v21 }
 0x267   : > { %3834 = vmatprep.subr.bf16.mxu0 %v3833_v17  ;;  %2253 = vmatprep.mubr.f32.mxu0 %v4063_v36 }
 0x269   : > { %3896 = vmatpush3.bf16.msra.mxu1 %v3893_v41 }
 0x26a   : > { %3898 = vmatprep.subr.bf16.mxu1 %v3897_v4  ;;  %3836 = vmatpush1.bf16.msra.mxu0 %v3835_v9 }
 0x26b   : > { %3838 = vmatprep.subr.bf16.mxu0 %v4604_v52 }
 0x26c   : > { %3595 = vmatmul.mubr.f32.vlgmr.msra.gmra.mrb[2].mxu1 %v4600_v16 }
 0x26d   : > { %3900 = vmatpush3.bf16.msra.mxu1 %v3897_v4  ;;  %2256 = vmatmul.mubr.f32.vlgmr.msra.gmra.mrb[4].mxu0 %v4562_v37 }
 0x26e   : > { %3902 = vmatprep.subr.bf16.mxu1 %v4533_v55  ;;  %3840 = vmatpush1.bf16.msra.mxu0 %v4629_v50 }
 0x26f   : > { %3842 = vmatprep.subr.bf16.mxu0 %v4514_v34  ;;  %3609 = vmatprep.mubr.f32.mxu1 %v4562_v37 }
 0x270   : > { %2261 = vmatprep.mubr.f32.mxu0 %v4063_v36 }
 0x271   : > { %3904 = vmatpush3.bf16.msra.mxu1 %v4533_v55  ;;  %2264 = vmatmul.mubr.f32.gmra.mrb[6].mxu0 %v4616_v23  ;;  %v3857_v55 = vpack.c.bf16 %v4898_v40, %v2076_v6 }
 0x272   : > { %3906 = vmatprep.subr.bf16.mxu1 %v3905_v60  ;;  %3844 = vmatpush1.bf16.msra.mxu0 %v4509_v26 }
 0x273   : > { %3846 = vmatprep.subr.bf16.mxu0 %v4667_v22  ;;  %2346 = vmatprep.mubr.f32.mxu0 %v4063_v36 }
 0x275   : > { %3908 = vmatpush3.bf16.msra.mxu1 %v3905_v60 }
 0x276   : > { %3910 = vmatprep.subr.bf16.mxu1 %v4610_v38  ;;  %3848 = vmatpush1.bf16.msra.mxu0 %v4674_v62 }
 0x277   : > { %3850 = vmatprep.subr.bf16.mxu0 %v3849_v42 }
 0x278   : > { %3610 = vmatmul.mubr.f32.vlgmr.msra.gmra.mrb[2].mxu1 %v4616_v23 }
 0x279   : > { %3912 = vmatpush3.bf16.msra.mxu1 %v4610_v38  ;;  %2350 = vmatmul.mubr.f32.vlgmr.msra.gmra.mrb[4].mxu0 %v4567_v39 }
 0x27a   : > { %3914 = vmatprep.subr.bf16.mxu1 %v4523_v19  ;;  %3852 = vmatpush1.bf16.msra.mxu0 %v3851_v18 }
 0x27b   : > { %3854 = vmatprep.subr.bf16.mxu0 %v4535_v11  ;;  %3624 = vmatprep.mubr.f32.mxu1 %v4567_v39  ;;  %v4899_v11 = vand.u32 4294901760, %v4656_v43  ;;  %v4901_v39 = vand.u32 4294901760, %v4671_v44 }
 0x27c   : > { %2355 = vmatprep.mubr.f32.mxu0 %v4063_v36 }
 0x27d   : > { %3916 = vmatpush3.bf16.msra.mxu1 %v4523_v19  ;;  %2359 = vmatmul.mubr.f32.gmra.mrb[6].mxu0 %v4645_v46  ;;  %v3921_v37 = vpack.c.bf16 %v4900_v10, %v4899_v11  ;;  %v3859_v54 = vpack.c.bf16 %v4902_v53, %v4901_v39 }
 0x27e   : > { %3918 = vmatprep.subr.bf16.mxu1 %v4710_v33  ;;  %3856 = vmatpush1.bf16.msra.mxu0 %v4538_v12  ;;  %v3929_v12 = vpack.c.bf16 %v2700_v30, %v2693_v31 }
 0x27f   : > { %3858 = vmatprep.subr.bf16.mxu0 %v3857_v55  ;;  %2465 = vmatprep.mubr.f32.mxu0 %v4063_v36 }
 0x281   : > { %3920 = vmatpush3.bf16.msra.mxu1 %v4710_v33 }
 0x282   : > { %3922 = vmatprep.subr.bf16.mxu1 %v3921_v37  ;;  %3860 = vmatpush1.bf16.msra.mxu0 %v3859_v54 }
 0x283   : > { %3862 = vmatprep.subr.bf16.mxu0 %v4604_v52 }
 0x284   : > { %3625 = vmatmul.mubr.f32.vlgmr.msra.gmra.mrb[2].mxu1 %v4645_v46 }
 0x285   : > { %3924 = vmatpush3.bf16.msra.mxu1 %v3921_v37  ;;  %2467 = vmatmul.mubr.f32.vlgmr.msra.gmra.mrb[4].mxu0 %v4552_v8 }
 0x286   : > { %3926 = vmatprep.subr.bf16.mxu1 %v4540_v61  ;;  %3864 = vmatpush1.bf16.msra.mxu0 %v4629_v50 }
 0x287   : > { %3866 = vmatprep.subr.bf16.mxu0 %v4514_v34  ;;  %3639 = vmatprep.mubr.f32.mxu1 %v4552_v8 }
 0x288   : > { %2472 = vmatprep.mubr.f32.mxu0 %v4063_v36 }
 0x289   : > { %3928 = vmatpush3.bf16.msra.mxu1 %v4540_v61  ;;  %2474 = vmatmul.mubr.f32.gmra.mrb[6].mxu0 %v4600_v16 }
 0x28a   : > { %3930 = vmatprep.subr.bf16.mxu1 %v3929_v12  ;;  %3868 = vmatpush1.bf16.msra.mxu0 %v4509_v26 }
 0x28b   : > { %3870 = vmatprep.subr.bf16.mxu0 %v4667_v22  ;;  %2556 = vmatprep.mubr.f32.mxu0 %v4063_v36  ;;  %v3131_v22 = vld [vmem:[%s4833_s14] sm:$0xff] }
 0x28d   : > { %3932 = vmatpush3.bf16.msra.mxu1 %v3929_v12 }
 0x28e   : > { %3934 = vmatprep.subr.bf16.mxu1 %v4610_v38  ;;  %3872 = vmatpush1.bf16.msra.mxu0 %v4674_v62 }
 0x290   : > { %3640 = vmatmul.mubr.f32.vlgmr.msra.gmra.mrb[2].mxu1 %v4600_v16 }
 0x291   : > { %3936 = vmatpush3.bf16.msra.mxu1 %v4610_v38  ;;  %2558 = vmatmul.mubr.f32.vlgmr.msra.gmra.mrb[4].mxu0 %v4552_v8 }
 0x292   : > { %3938 = vmatprep.subr.bf16.mxu1 %v4523_v19  ;;  %2563 = vmatprep.mubr.f32.mxu0 %v4063_v36 }
 0x293   : > { %3654 = vmatprep.mubr.f32.mxu1 %v4552_v8 }
 0x295   : > { %3940 = vmatpush3.bf16.msra.mxu1 %v4523_v19  ;;  %2565 = vmatmul.mubr.f32.gmra.mrb[6].mxu0 %v4600_v16 }
 0x296   : > { %3942 = vmatprep.subr.bf16.mxu1 %v4710_v33 }
 0x299   : > { %3944 = vmatpush3.bf16.msra.mxu1 %v4710_v33 }
 0x29c   : > { %3655 = vmatmul.mubr.f32.vlgmr.msra.gmra.mrb[2].mxu1 %v4600_v16 }
 0x364   : > { %v2559_v26 = vpop.f32.mrb[4].mxu0 }
 0x365   : > { %3125 = vst [vmem:[%s453_s18] sm:$0xff] %v2559_v26  ;;  %v3147_v34 = vmul.f32 %v2559_v26, %v2559_v26  ;;  %v2561_v19 = vpop.f32.mrb[5].mxu0 }
 0x366   : > { %3126 = vst [vmem:[%s453_s18 + $0x8] sm:$0xff] %v2561_v19  ;;  %v3148_v61 = vmul.f32 %v2561_v19, %v2561_v19  ;;  %v3133_v8 = vadd.f32 %v2561_v19, %v2559_v26 }
 0x368   : > { %v2566_v16 = vpop.f32.mrb[6].mxu0  ;;  %v3153_v52 = vadd.f32 %v3148_v61, %v3147_v34 }
 0x369   : > { %3128 = vst [vmem:[%s453_s18 + $0x18] sm:$0xff] %v2566_v16  ;;  %v3150_v38 = vmul.f32 %v2566_v16, %v2566_v16  ;;  %v2568_v57 = vpop.f32.mrb[7].mxu0 }
 0x36a   : > { %3129 = vst [vmem:[%s453_s18 + $0x20] sm:$0xff] %v2568_v57  ;;  %v3137_v23 = vadd.f32 %v2568_v57, %v2566_v16  ;;  %v3151_v63 = vmul.f32 %v2568_v57, %v2568_v57 }
 0x36c   : > { %v3157_v28 = vadd.f32 %v3151_v63, %v3150_v38 }
 0x36f   : > { %v3656_v50 = vpop.f32.mrb[2].mxu1 }
 0x370   : > { %3130 = vst [vmem:[%s453_s18 + $0x28] sm:$0xff] %v3656_v50  ;;  %v3115_v35 = vpop.f32.mrb[3].mxu1  ;;  %v3138_v21 = vadd.f32 %v3656_v50, %v3137_v23  ;;  %v3152_v3 = vmul.f32 %v3656_v50, %v3656_v50 }
 0x371   : > { %3127 = vst [vmem:[%s453_s18 + $0x10] sm:$0xff] %v3115_v35  ;;  %v3149_v46 = vmul.f32 %v3115_v35, %v3115_v35  ;;  %v3134_v5 = vadd.f32 %v3133_v8, %v3115_v35 }
 0x372   : > { %3139 = vadd.xlane.f32.xlu0 %v3138_v21  ;;  %v3158_v29 = vadd.f32 %v3157_v28, %v3152_v3 }
 0x373   : > { %3135 = vadd.xlane.f32.xlu1 %v3134_v5  ;;  %v3154_v43 = vadd.f32 %v3153_v52, %v3149_v46 }
 0x376   : > { %3155 = vadd.xlane.f32.xlu0 %v3154_v43 }
 0x377   : > { %3159 = vadd.xlane.f32.xlu1 %v3158_v29 }
 0x3ff   : > { %v3140_v44 = vpop.xlane.xlu0 %3139 }
 0x400   : > { %v3136_v62 = vpop.xlane.xlu1 %3135  ;;  %v3142_v27 = vadd.f32 %v3140_v44, %v3132_v47 }
 0x401   : > { %v3141_v6 = vadd.f32 %v3136_v62, %v3131_v22 }
 0x402   : > { %3144 = vst.msk [vmem:[%s4833_s14 + $0x8] sm:$0xff] %vm469_vm2, %v3142_v27 }
 0x403   : > { %3143 = vst.msk [vmem:[%s4833_s14] sm:$0xff] %vm469_vm2, %v3141_v6  ;;  %v3156_v56 = vpop.xlane.xlu0 %3155 }
 0x404   : > { %v3160_v58 = vpop.xlane.xlu1 %3159  ;;  %v3161_v0 = vadd.f32 %v3156_v56, %v3145_v32 }
 0x405   : > { %v3162_v51 = vadd.f32 %v3160_v58, %v3146_v13 }
 0x406   : > { %3163 = vst.msk [vmem:[%s464_s19] sm:$0xff] %vm469_vm2, %v3161_v0 }
 0x407   : > { %3164 = vst.msk [vmem:[%s464_s19 + $0x8] sm:$0xff] %vm469_vm2, %v3162_v51 }
 0x408 PF: > { %s20_s11 = sadd.s32 1, %s4059_s11   ;;  %s4903_s30 = smov %s4055_s10 }
 0x409   : > { %p17_p5 = scmp.ge.s32.totalorder %s20_s11, 4   ;;  %s4904_s10 = smov %s4906_s12 }
 0x40b   :  { %19 = sbr.rel (!%p17_p5) target bundleno = 2 (0x2), region = 112 }

</bundles_post_ra>
